<compile_context>
chip_gen: v7x
topology: tpu7x:2x2x1
jax: 0.10.0
libtpu: 0.0.40
codegen_flags: <defaults>
</compile_context>

<pallas_src>
import functools
import math

import jax
import jax.numpy as jnp
from jax import lax
from jax.experimental import pallas as pl
from jax.experimental.pallas import tpu as pltpu

LN_EPS = 1e-5  # PyTorch nn.LayerNorm default


def _layernorm(x, gamma, beta):
    mean = jnp.mean(x, axis=-1, keepdims=True)
    var = jnp.mean(jnp.square(x - mean), axis=-1, keepdims=True)
    return (x - mean) * lax.rsqrt(var + LN_EPS) * gamma + beta


def _gelu_tanh(x):
    # TODO(synk): PyTorch nn.GELU() defaults to the exact erf form; the tanh
    # approximation (|diff| < ~3e-4) is used so only EUP-supported
    # transcendentals (tanh) appear inside the kernel.
    c = math.sqrt(2.0 / math.pi)
    return 0.5 * x * (1.0 + jnp.tanh(c * (x + 0.044715 * x * x * x)))


# ---------------------------------------------------------------------------
# Fused per-layer kernel:
#   y = x + to_out(MHA(LN(x)));  y = y + W2 @ GELU(W1 @ LN(y) + b1) + b2
#   (optionally followed by the transformer's final LayerNorm on the last layer)
# Grid: (batch, query_tile).  K/V are cached in VMEM scratch at t == 0.
# ---------------------------------------------------------------------------
def _layer_kernel(x_ref, wqkv_ref, wo_ref, bo_ref, ag_ref, ab_ref,
                  w1_ref, b1_ref, w2_ref, b2_ref, fg_ref, fb_ref,
                  *rest, num_heads, q_block, seq_len, apply_final_ln):
    if apply_final_ln:
        lg_ref, lb_ref, o_ref, kv_ref, q_ref, att_ref = rest
    else:
        lg_ref = lb_ref = None
        o_ref, kv_ref, q_ref, att_ref = rest

    n_pad, d = x_ref.shape
    hd = d // num_heads
    t = pl.program_id(1)
    a_gamma = ag_ref[0]
    a_beta = ab_ref[0]

    # --- K/V cache: LayerNorm + K/V projection of the full sequence, computed
    #     once per batch element (t == 0) and reused for every query tile.
    @pl.when(t == 0)
    def _fill_kv():
        def chunk(c, carry):
            r0 = pl.multiple_of(c * q_block, q_block)
            rows = x_ref[pl.ds(r0, q_block), :].astype(jnp.float32)
            xn = _layernorm(rows, a_gamma, a_beta).astype(jnp.bfloat16)
            kv_ref[pl.ds(r0, q_block), :d] = jnp.dot(
                xn, wqkv_ref[:, d:2 * d],
                preferred_element_type=jnp.float32).astype(kv_ref.dtype)
            kv_ref[pl.ds(r0, q_block), d:] = jnp.dot(
                xn, wqkv_ref[:, 2 * d:],
                preferred_element_type=jnp.float32).astype(kv_ref.dtype)
            return carry

        lax.fori_loop(0, n_pad // q_block, chunk, None)

    # --- Q projection for this query tile (softmax scale folded into Wq).
    q0 = pl.multiple_of(t * q_block, q_block)
    xq_n = _layernorm(x_ref[pl.ds(q0, q_block), :].astype(jnp.float32),
                      a_gamma, a_beta).astype(jnp.bfloat16)
    q_ref[...] = jnp.dot(xq_n, wqkv_ref[:, :d],
                         preferred_element_type=jnp.float32).astype(q_ref.dtype)

    # --- Per-head attention.  All per-head slicing goes through VMEM Refs.
    if seq_len < n_pad:  # static: mask padded key columns (zero-padded rows)
        col = lax.broadcasted_iota(jnp.int32, (q_block, n_pad), 1)
        key_bias = jnp.where(col < seq_len, 0.0, -1e30).astype(jnp.float32)
    else:
        key_bias = None
    nt_dims = (((1,), (1,)), ((), ()))  # QK^T without transposing K

    def head(h, carry):
        off = h * hd
        qh = q_ref[:, pl.ds(off, hd)]            # (TQ, hd) bf16
        kh = kv_ref[:, pl.ds(off, hd)]           # (N,  hd) bf16
        vh = kv_ref[:, pl.ds(d + off, hd)]       # (N,  hd) bf16
        s = lax.dot_general(qh, kh, nt_dims,
                            preferred_element_type=jnp.float32)  # (TQ, N)
        if key_bias is not None:
            s = s + key_bias
        s = s - jnp.max(s, axis=-1, keepdims=True)
        p = jnp.exp(s)
        p = p * pl.reciprocal(jnp.sum(p, axis=-1, keepdims=True), approx=True)
        att_ref[:, pl.ds(off, hd)] = jnp.dot(
            p.astype(jnp.bfloat16), vh,
            preferred_element_type=jnp.float32).astype(att_ref.dtype)
        return carry

    lax.fori_loop(0, num_heads, head, None, unroll=True)

    # --- Attention output projection + residual (query rows re-read from VMEM).
    x_q = x_ref[pl.ds(q0, q_block), :].astype(jnp.float32)
    y = x_q + jnp.dot(att_ref[...], wo_ref[...],
                      preferred_element_type=jnp.float32) + bo_ref[0]

    # --- FeedForward: LayerNorm -> Linear -> GELU -> Linear, + residual.
    #     (nn.Dropout is the identity in eval mode.)
    xn2 = _layernorm(y, fg_ref[0], fb_ref[0]).astype(jnp.bfloat16)
    hid = jnp.dot(xn2, w1_ref[...], preferred_element_type=jnp.float32) + b1_ref[0]
    hid = _gelu_tanh(hid).astype(jnp.bfloat16)
    y = y + jnp.dot(hid, w2_ref[...], preferred_element_type=jnp.float32) + b2_ref[0]

    # --- Final transformer LayerNorm fused into the last layer's kernel.
    if apply_final_ln:
        y = _layernorm(y, lg_ref[0], lb_ref[0])

    o_ref[...] = y.astype(o_ref.dtype)


# ---------------------------------------------------------------------------
# pallas_call plumbing
# ---------------------------------------------------------------------------
def _const_spec(shape):
    # Constant index map + single buffering: the block is resident across the
    # whole grid, so double-buffering it would only waste VMEM.
    return pl.BlockSpec(shape, lambda b, t: (0,) * len(shape),
                        pipeline_mode=pl.Buffered(1))


def _pick_block(n, target=256):
    # One tile if the sequence fits a single target-sized tile, otherwise an
    # MXU-friendly `target` (256 for v6e/v7x; pass 128 on v5e).
    return n if n <= target else target


def _transformer_layer(x, lw, *, num_heads, q_block, seq_len, final_ln=None):
    B, N_pad, D = x.shape
    HID = lw["w1_t"].shape[1]
    n_tiles = N_pad // q_block
    apply_final = final_ln is not None

    cost = pl.CostEstimate(
        flops=int(B * (8 * N_pad * D * D + 4 * N_pad * N_pad * D
                       + 4 * N_pad * D * HID)),
        transcendentals=int(B * (num_heads * N_pad * N_pad + N_pad * HID)),
        bytes_accessed=int(2 * B * N_pad * D * 4
                           + (4 * D * D + 2 * D * HID) * 2),
    )
    kernel = functools.partial(
        _layer_kernel, num_heads=num_heads, q_block=q_block,
        seq_len=seq_len, apply_final_ln=apply_final)

    in_specs = [
        pl.BlockSpec((None, N_pad, D), lambda b, t: (b, 0, 0)),  # full sequence
        _const_spec((D, 3 * D)),   # [Wq*scale | Wk | Wv]^T  bf16
        _const_spec((D, D)),       # Wo^T bf16
        _const_spec((1, D)),       # b_out
        _const_spec((1, D)),       # attn LN gamma
        _const_spec((1, D)),       # attn LN beta
        _const_spec((D, HID)),     # W1^T bf16
        _const_spec((1, HID)),     # b1
        _const_spec((HID, D)),     # W2^T bf16
        _const_spec((1, D)),       # b2
        _const_spec((1, D)),       # ff LN gamma
        _const_spec((1, D)),       # ff LN beta
    ]
    args = [x, lw["wqkv_t"], lw["wo_t"], lw["bo"], lw["a_g"], lw["a_b"],
            lw["w1_t"], lw["b1"], lw["w2_t"], lw["b2"], lw["f_g"], lw["f_b"]]
    if apply_final:
        in_specs += [_const_spec((1, D)), _const_spec((1, D))]
        args += [final_ln[0], final_ln[1]]

    return pl.pallas_call(
        kernel,
        out_shape=jax.ShapeDtypeStruct((B, N_pad, D), x.dtype),
        grid=(B, n_tiles),
        in_specs=in_specs,
        out_specs=pl.BlockSpec((None, q_block, D), lambda b, t: (b, t, 0)),
        scratch_shapes=[
            pltpu.VMEM((N_pad, 2 * D), jnp.bfloat16),   # cached K | V
            pltpu.VMEM((q_block, D), jnp.bfloat16),     # Q for this tile
            pltpu.VMEM((q_block, D), jnp.bfloat16),     # merged head outputs
        ],
        compiler_params=pltpu.CompilerParams(
            dimension_semantics=("parallel", "arbitrary"),
            vmem_limit_bytes=64 * 1024 * 1024),
        cost_estimate=cost,
    )(*args)


def prepare_params(params, *, num_heads):
    """One-time weight prep (hoisted out of the per-forward path)."""
    D = params["ln_g"].shape[0]
    hd = D // num_heads
    scale = hd ** (-0.5)
    layers = []
    for layer in params["layers"]:
        a, f = layer["attn"], layer["ff"]
        layers.append(dict(
            wqkv_t=jnp.concatenate(
                [a["wq"].T * scale, a["wk"].T, a["wv"].T],
                axis=1).astype(jnp.bfloat16),
            wo_t=a["wo"].T.astype(jnp.bfloat16),
            bo=a["bo"].reshape(1, D).astype(jnp.float32),
            a_g=a["ln_g"].reshape(1, D).astype(jnp.float32),
            a_b=a["ln_b"].reshape(1, D).astype(jnp.float32),
            w1_t=f["w1"].T.astype(jnp.bfloat16),
            b1=f["b1"].reshape(1, -1).astype(jnp.float32),
            w2_t=f["w2"].T.astype(jnp.bfloat16),
            b2=f["b2"].reshape(1, D).astype(jnp.float32),
            f_g=f["ln_g"].reshape(1, D).astype(jnp.float32),
            f_b=f["ln_b"].reshape(1, D).astype(jnp.float32),
        ))
    prepared = dict(
        layers=layers,
        ln_g=params["ln_g"].reshape(1, D).astype(jnp.float32),
        ln_b=params["ln_b"].reshape(1, D).astype(jnp.float32),
    )
    return jax.block_until_ready(prepared)


def transformer_forward(x, prepared, *, num_heads, q_block=None,
                        block_target=256):
    """Pallas forward for the PyTorch `Transformer` module (eval mode)."""
    B, N, D = x.shape
    assert D % num_heads == 0
    q_block = _pick_block(N, block_target) if q_block is None else q_block
    if N > q_block:                      # tiled case: keep tiles 8-row aligned
        q_block = max(8, (q_block // 8) * 8)
    N_pad = -(-N // q_block) * q_block
    if N_pad != N:
        x = jnp.pad(x, ((0, 0), (0, N_pad - N), (0, 0)))

    n_layers = len(prepared["layers"])
    for i, lw in enumerate(prepared["layers"]):
        final_ln = ((prepared["ln_g"], prepared["ln_b"])
                    if i == n_layers - 1 else None)
        x = _transformer_layer(x, lw, num_heads=num_heads, q_block=q_block,
                               seq_len=N, final_ln=final_ln)
    return x[:, :N, :] if N_pad != N else x


# ---------------------------------------------------------------------------
# Pure-JAX reference matching the PyTorch forward (f32 math).
# ---------------------------------------------------------------------------
def transformer_ref(x, params, *, num_heads):
    B, N, D = x.shape
    hd = D // num_heads
    scale = hd ** (-0.5)

    def ln(v, g, b):
        mu = jnp.mean(v, axis=-1, keepdims=True)
        var = jnp.mean((v - mu) ** 2, axis=-1, keepdims=True)
        return (v - mu) / jnp.sqrt(var + LN_EPS) * g + b

    for layer in params["layers"]:
        a = layer["attn"]
        xn = ln(x, a["ln_g"], a["ln_b"])
        q, k, v = xn @ a["wq"].T, xn @ a["wk"].T, xn @ a["wv"].T
        split = lambda t: t.reshape(B, N, num_heads, hd).transpose(0, 2, 1, 3)
        qh, kh, vh = split(q), split(k), split(v)
        s = jnp.einsum("bhnd,bhmd->bhnm", qh, kh) * scale
        p = jax.nn.softmax(s, axis=-1)
        o = jnp.einsum("bhnm,bhmd->bhnd", p, vh).transpose(0, 2, 1, 3).reshape(B, N, D)
        x = x + (o @ a["wo"].T + a["bo"])

        f = layer["ff"]
        xn = ln(x, f["ln_g"], f["ln_b"])
        h = _gelu_tanh(xn @ f["w1"].T + f["b1"])
        x = x + (h @ f["w2"].T + f["b2"])

    return ln(x, params["ln_g"], params["ln_b"])


if __name__ == "__main__":
    depth, heads, dim, hidden_dim, do_p = 2, 4, 32, 64, 0.0
    B, N = 2, 8
    _ = do_p  # eval-mode forward: nn.Dropout is the identity

    key = jax.random.PRNGKey(0)
    keys = iter(jax.random.split(key, 64))

    def linear_w(k, out_f, in_f, s=0.05):
        return s * jax.random.normal(k, (out_f, in_f), dtype=jnp.float32)

    def vec(k, n, s=0.05):
        return s * jax.random.normal(k, (n,), dtype=jnp.float32)

    layers = []
    for _ in range(depth):
        attn = dict(
            wq=linear_w(next(keys), dim, dim),
            wk=linear_w(next(keys), dim, dim),
            wv=linear_w(next(keys), dim, dim),
            wo=linear_w(next(keys), dim, dim),
            bo=vec(next(keys), dim),
            ln_g=1.0 + 0.1 * jax.random.normal(next(keys), (dim,), dtype=jnp.float32),
            ln_b=vec(next(keys), dim, 0.1),
        )
        ff = dict(
            w1=linear_w(next(keys), hidden_dim, dim),
            b1=vec(next(keys), hidden_dim),
            w2=linear_w(next(keys), dim, hidden_dim),
            b2=vec(next(keys), dim),
            ln_g=1.0 + 0.1 * jax.random.normal(next(keys), (dim,), dtype=jnp.float32),
            ln_b=vec(next(keys), dim, 0.1),
        )
        layers.append(dict(attn=attn, ff=ff))

    params = dict(
        layers=layers,
        ln_g=1.0 + 0.1 * jax.random.normal(next(keys), (dim,), dtype=jnp.float32),
        ln_b=vec(next(keys), dim, 0.1),
    )
    x = jax.random.normal(next(keys), (B, N, dim), dtype=jnp.float32)

    # One-time parameter prep (transpose / fuse / scale-fold / bf16 cast).
    prepared = prepare_params(params, num_heads=heads)

    # Case 1: sequence length divides the tile.
    out = jax.block_until_ready(transformer_forward(x, prepared, num_heads=heads))
    ref = transformer_ref(x, params, num_heads=heads)
    assert out.shape == ref.shape
    # bf16 MXU operands + approx reciprocal vs an all-f32 reference -> loose tol.
    assert jnp.allclose(out, ref, atol=3e-2, rtol=3e-2), (
        "mismatch vs reference: max abs err = %e"
        % float(jnp.max(jnp.abs(out - ref))))

    # Case 2: ragged sequence length -> exercises padding + in-kernel key mask.
    x2 = x[:, :7, :]
    out2 = jax.block_until_ready(
        transformer_forward(x2, prepared, num_heads=heads, q_block=8))
    ref2 = transformer_ref(x2, params, num_heads=heads)
    assert out2.shape == ref2.shape
    assert jnp.allclose(out2, ref2, atol=3e-2, rtol=3e-2), (
        "ragged-length mismatch vs reference: max abs err = %e"
        % float(jnp.max(jnp.abs(out2 - ref2))))

    print("KERNEL_OK")
</pallas_src>

<mosaic_0001>
module attributes {stable_mosaic.version = 11 : i64} {
  func.func @_layer_kernel(%arg0: i32, %arg1: i32, %arg2: memref<1x8x32xf32, #tpu.memory_space<vmem>>, %arg3: memref<32x96xbf16, #tpu.memory_space<vmem>>, %arg4: memref<32x32xbf16, #tpu.memory_space<vmem>>, %arg5: memref<1x32xf32, #tpu.memory_space<vmem>>, %arg6: memref<1x32xf32, #tpu.memory_space<vmem>>, %arg7: memref<1x32xf32, #tpu.memory_space<vmem>>, %arg8: memref<32x64xbf16, #tpu.memory_space<vmem>>, %arg9: memref<1x64xf32, #tpu.memory_space<vmem>>, %arg10: memref<64x32xbf16, #tpu.memory_space<vmem>>, %arg11: memref<1x32xf32, #tpu.memory_space<vmem>>, %arg12: memref<1x32xf32, #tpu.memory_space<vmem>>, %arg13: memref<1x32xf32, #tpu.memory_space<vmem>>, %arg14: memref<1x8x32xf32, #tpu.memory_space<vmem>>, %arg15: memref<8x64xbf16, #tpu.memory_space<vmem>>, %arg16: memref<8x32xbf16, #tpu.memory_space<vmem>>, %arg17: memref<8x32xbf16, #tpu.memory_space<vmem>>) attributes {dimension_semantics = [#tpu.dimension_semantics<parallel>, #tpu.dimension_semantics<arbitrary>], iteration_bounds = array<i64: 2, 1>, scalar_prefetch = 0 : i64, scratch_operands = 3 : i64, tpu.core_type = #tpu.core_type<tc>, window_params = [{transform_indices = @transform_0, window_bounds = array<i64: 1, 8, 32>}, {pipeline_mode = #tpu.pipeline_mode<synchronous>, transform_indices = @transform_1, window_bounds = array<i64: 32, 96>}, {pipeline_mode = #tpu.pipeline_mode<synchronous>, transform_indices = @transform_2, window_bounds = array<i64: 32, 32>}, {pipeline_mode = #tpu.pipeline_mode<synchronous>, transform_indices = @transform_3, window_bounds = array<i64: 1, 32>}, {pipeline_mode = #tpu.pipeline_mode<synchronous>, transform_indices = @transform_4, window_bounds = array<i64: 1, 32>}, {pipeline_mode = #tpu.pipeline_mode<synchronous>, transform_indices = @transform_5, window_bounds = array<i64: 1, 32>}, {pipeline_mode = #tpu.pipeline_mode<synchronous>, transform_indices = @transform_6, window_bounds = array<i64: 32, 64>}, {pipeline_mode = #tpu.pipeline_mode<synchronous>, transform_indices = @transform_7, window_bounds = array<i64: 1, 64>}, {pipeline_mode = #tpu.pipeline_mode<synchronous>, transform_indices = @transform_8, window_bounds = array<i64: 64, 32>}, {pipeline_mode = #tpu.pipeline_mode<synchronous>, transform_indices = @transform_9, window_bounds = array<i64: 1, 32>}, {pipeline_mode = #tpu.pipeline_mode<synchronous>, transform_indices = @transform_10, window_bounds = array<i64: 1, 32>}, {pipeline_mode = #tpu.pipeline_mode<synchronous>, transform_indices = @transform_11, window_bounds = array<i64: 1, 32>}, {transform_indices = @transform_12, window_bounds = array<i64: 1, 8, 32>}]} {
    %c0 = arith.constant 0 : index
    %c0_0 = arith.constant 0 : index
    %0 = vector.load %arg6[%c0, %c0_0] : memref<1x32xf32, #tpu.memory_space<vmem>>, vector<1x32xf32>
    %1 = vector.shape_cast %0 : vector<1x32xf32> to vector<32xf32>
    %c0_1 = arith.constant 0 : index
    %c0_2 = arith.constant 0 : index
    %2 = vector.load %arg7[%c0_1, %c0_2] : memref<1x32xf32, #tpu.memory_space<vmem>>, vector<1x32xf32>
    %3 = vector.shape_cast %2 : vector<1x32xf32> to vector<32xf32>
    %c0_i32 = arith.constant 0 : i32
    %4 = arith.cmpi eq, %arg1, %c0_i32 : i32
    %5 = arith.extui %4 : i1 to i32
    %c0_i32_3 = arith.constant 0 : i32
    %6 = arith.cmpi ne, %5, %c0_i32_3 : i32
    scf.if %6 {
      %c0_i32_90 = arith.constant 0 : i32
      %c8_i32_91 = arith.constant 8 : i32
      %210 = arith.muli %c0_i32_90, %c8_i32_91 : i32
      %211 = tpu.assume_multiple %210, 8 : i32
      %c0_92 = arith.constant 0 : index
      %212 = arith.index_cast %211 : i32 to index
      %c0_93 = arith.constant 0 : index
      %213 = vector.load %arg2[%c0_92, %212, %c0_93] : memref<1x8x32xf32, #tpu.memory_space<vmem>>, vector<1x8x32xf32>
      %214 = vector.shape_cast %213 : vector<1x8x32xf32> to vector<8x32xf32>
      %cst_94 = arith.constant dense<0.000000e+00> : vector<8xf32>
      %215 = vector.multi_reduction <add>, %214, %cst_94 [1] : vector<8x32xf32> to vector<8xf32>
      %216 = vector.shape_cast %215 : vector<8xf32> to vector<8x1xf32>
      %cst_95 = arith.constant 3.200000e+01 : f32
      %217 = vector.broadcast %cst_95 : f32 to vector<8x1xf32>
      %218 = arith.divf %216, %217 : vector<8x1xf32>
      %219 = vector.broadcast %218 : vector<8x1xf32> to vector<8x32xf32>
      %220 = arith.subf %214, %219 : vector<8x32xf32>
      %221 = arith.mulf %220, %220 : vector<8x32xf32>
      %cst_96 = arith.constant dense<0.000000e+00> : vector<8xf32>
      %222 = vector.multi_reduction <add>, %221, %cst_96 [1] : vector<8x32xf32> to vector<8xf32>
      %223 = vector.shape_cast %222 : vector<8xf32> to vector<8x1xf32>
      %cst_97 = arith.constant 3.200000e+01 : f32
      %224 = vector.broadcast %cst_97 : f32 to vector<8x1xf32>
      %225 = arith.divf %223, %224 : vector<8x1xf32>
      %226 = vector.broadcast %218 : vector<8x1xf32> to vector<8x32xf32>
      %227 = arith.subf %214, %226 : vector<8x32xf32>
      %cst_98 = arith.constant 9.99999974E-6 : f32
      %228 = vector.broadcast %cst_98 : f32 to vector<8x1xf32>
      %229 = arith.addf %225, %228 : vector<8x1xf32>
      %230 = math.rsqrt %229 : vector<8x1xf32>
      %231 = vector.broadcast %230 : vector<8x1xf32> to vector<8x32xf32>
      %232 = arith.mulf %227, %231 : vector<8x32xf32>
      %233 = vector.shape_cast %1 : vector<32xf32> to vector<1x32xf32>
      %234 = vector.broadcast %233 : vector<1x32xf32> to vector<8x32xf32>
      %235 = arith.mulf %232, %234 : vector<8x32xf32>
      %236 = vector.shape_cast %3 : vector<32xf32> to vector<1x32xf32>
      %237 = vector.broadcast %236 : vector<1x32xf32> to vector<8x32xf32>
      %238 = arith.addf %235, %237 : vector<8x32xf32>
      %239 = arith.truncf %238 : vector<8x32xf32> to vector<8x32xbf16>
      %c0_99 = arith.constant 0 : index
      %c32 = arith.constant 32 : index
      %240 = vector.load %arg3[%c0_99, %c32] : memref<32x96xbf16, #tpu.memory_space<vmem>>, vector<32x32xbf16>
      %cst_100 = arith.constant dense<0.000000e+00> : vector<8x32xf32>
      %241 = tpu.matmul %239, %240, %cst_100 {dimension_numbers = #tpu.dot_dimension_numbers<[1], [0], [0], [1], [0, 0, 1, 1], [], []>} : vector<8x32xbf16>, vector<32x32xbf16>, vector<8x32xf32> -> vector<8x32xf32>
      %242 = arith.truncf %241 : vector<8x32xf32> to vector<8x32xbf16>
      %243 = arith.index_cast %211 : i32 to index
      %c0_101 = arith.constant 0 : index
      %244 = vector.load %arg15[%243, %c0_101] : memref<8x64xbf16, #tpu.memory_space<vmem>>, vector<8x32xbf16>
      tpu.vector_store %arg15[%243, %c0_101], %242 {strides = array<i32>} : memref<8x64xbf16, #tpu.memory_space<vmem>>, vector<8x32xbf16>,
      %c0_102 = arith.constant 0 : index
      %c64 = arith.constant 64 : index
      %245 = vector.load %arg3[%c0_102, %c64] : memref<32x96xbf16, #tpu.memory_space<vmem>>, vector<32x32xbf16>
      %cst_103 = arith.constant dense<0.000000e+00> : vector<8x32xf32>
      %246 = tpu.matmul %239, %245, %cst_103 {dimension_numbers = #tpu.dot_dimension_numbers<[1], [0], [0], [1], [0, 0, 1, 1], [], []>} : vector<8x32xbf16>, vector<32x32xbf16>, vector<8x32xf32> -> vector<8x32xf32>
      %247 = arith.truncf %246 : vector<8x32xf32> to vector<8x32xbf16>
      %248 = arith.index_cast %211 : i32 to index
      %c32_104 = arith.constant 32 : index
      %249 = vector.load %arg15[%248, %c32_104] : memref<8x64xbf16, #tpu.memory_space<vmem>>, vector<8x32xbf16>
      tpu.vector_store %arg15[%248, %c32_104], %247 {strides = array<i32>} : memref<8x64xbf16, #tpu.memory_space<vmem>>, vector<8x32xbf16>,
      %c1_i32_105 = arith.constant 1 : i32
    } else {
    }
    %c8_i32 = arith.constant 8 : i32
    %7 = arith.muli %arg1, %c8_i32 : i32
    %8 = tpu.assume_multiple %7, 8 : i32
    %c0_4 = arith.constant 0 : index
    %9 = arith.index_cast %8 : i32 to index
    %c0_5 = arith.constant 0 : index
    %10 = vector.load %arg2[%c0_4, %9, %c0_5] : memref<1x8x32xf32, #tpu.memory_space<vmem>>, vector<1x8x32xf32>
    %11 = vector.shape_cast %10 : vector<1x8x32xf32> to vector<8x32xf32>
    %cst = arith.constant dense<0.000000e+00> : vector<8xf32>
    %12 = vector.multi_reduction <add>, %11, %cst [1] : vector<8x32xf32> to vector<8xf32>
    %13 = vector.shape_cast %12 : vector<8xf32> to vector<8x1xf32>
    %cst_6 = arith.constant 3.200000e+01 : f32
    %14 = vector.broadcast %cst_6 : f32 to vector<8x1xf32>
    %15 = arith.divf %13, %14 : vector<8x1xf32>
    %16 = vector.broadcast %15 : vector<8x1xf32> to vector<8x32xf32>
    %17 = arith.subf %11, %16 : vector<8x32xf32>
    %18 = arith.mulf %17, %17 : vector<8x32xf32>
    %cst_7 = arith.constant dense<0.000000e+00> : vector<8xf32>
    %19 = vector.multi_reduction <add>, %18, %cst_7 [1] : vector<8x32xf32> to vector<8xf32>
    %20 = vector.shape_cast %19 : vector<8xf32> to vector<8x1xf32>
    %cst_8 = arith.constant 3.200000e+01 : f32
    %21 = vector.broadcast %cst_8 : f32 to vector<8x1xf32>
    %22 = arith.divf %20, %21 : vector<8x1xf32>
    %23 = vector.broadcast %15 : vector<8x1xf32> to vector<8x32xf32>
    %24 = arith.subf %11, %23 : vector<8x32xf32>
    %cst_9 = arith.constant 9.99999974E-6 : f32
    %25 = vector.broadcast %cst_9 : f32 to vector<8x1xf32>
    %26 = arith.addf %22, %25 : vector<8x1xf32>
    %27 = math.rsqrt %26 : vector<8x1xf32>
    %28 = vector.broadcast %27 : vector<8x1xf32> to vector<8x32xf32>
    %29 = arith.mulf %24, %28 : vector<8x32xf32>
    %30 = vector.shape_cast %1 : vector<32xf32> to vector<1x32xf32>
    %31 = vector.broadcast %30 : vector<1x32xf32> to vector<8x32xf32>
    %32 = arith.mulf %29, %31 : vector<8x32xf32>
    %33 = vector.shape_cast %3 : vector<32xf32> to vector<1x32xf32>
    %34 = vector.broadcast %33 : vector<1x32xf32> to vector<8x32xf32>
    %35 = arith.addf %32, %34 : vector<8x32xf32>
    %36 = arith.truncf %35 : vector<8x32xf32> to vector<8x32xbf16>
    %c0_10 = arith.constant 0 : index
    %c0_11 = arith.constant 0 : index
    %37 = vector.load %arg3[%c0_10, %c0_11] : memref<32x96xbf16, #tpu.memory_space<vmem>>, vector<32x32xbf16>
    %cst_12 = arith.constant dense<0.000000e+00> : vector<8x32xf32>
    %38 = tpu.matmul %36, %37, %cst_12 {dimension_numbers = #tpu.dot_dimension_numbers<[1], [0], [0], [1], [0, 0, 1, 1], [], []>} : vector<8x32xbf16>, vector<32x32xbf16>, vector<8x32xf32> -> vector<8x32xf32>
    %39 = arith.truncf %38 : vector<8x32xf32> to vector<8x32xbf16>
    %c0_13 = arith.constant 0 : index
    %c0_14 = arith.constant 0 : index
    %40 = vector.load %arg16[%c0_13, %c0_14] : memref<8x32xbf16, #tpu.memory_space<vmem>>, vector<8x32xbf16>
    tpu.vector_store %arg16[%c0_13, %c0_14], %39 {strides = array<i32>} : memref<8x32xbf16, #tpu.memory_space<vmem>>, vector<8x32xbf16>,
    %c0_i32_15 = arith.constant 0 : i32
    %c8_i32_16 = arith.constant 8 : i32
    %41 = arith.muli %c0_i32_15, %c8_i32_16 : i32
    %c0_17 = arith.constant 0 : index
    %42 = arith.index_cast %41 : i32 to index
    %43 = vector.load %arg16[%c0_17, %42] : memref<8x32xbf16, #tpu.memory_space<vmem>>, vector<8x8xbf16>
    %c0_18 = arith.constant 0 : index
    %44 = arith.index_cast %41 : i32 to index
    %45 = vector.load %arg15[%c0_18, %44] : memref<8x64xbf16, #tpu.memory_space<vmem>>, vector<8x8xbf16>
    %c32_i32 = arith.constant 32 : i32
    %46 = arith.addi %c32_i32, %41 : i32
    %c0_19 = arith.constant 0 : index
    %47 = arith.index_cast %46 : i32 to index
    %48 = vector.load %arg15[%c0_19, %47] : memref<8x64xbf16, #tpu.memory_space<vmem>>, vector<8x8xbf16>
    %cst_20 = arith.constant dense<0.000000e+00> : vector<8x8xf32>
    %49 = tpu.matmul %43, %45, %cst_20 {dimension_numbers = #tpu.dot_dimension_numbers<[1], [1], [0], [0], [0, 0, 1, 0], [], []>} : vector<8x8xbf16>, vector<8x8xbf16>, vector<8x8xf32> -> vector<8x8xf32>
    %cst_21 = arith.constant dense<0xFF800000> : vector<8xf32>
    %50 = vector.multi_reduction <maximumf>, %49, %cst_21 [1] : vector<8x8xf32> to vector<8xf32>
    %51 = vector.shape_cast %50 : vector<8xf32> to vector<8x1xf32>
    %52 = vector.broadcast %51 : vector<8x1xf32> to vector<8x8xf32>
    %53 = arith.subf %49, %52 : vector<8x8xf32>
    %54 = math.exp %53 : vector<8x8xf32>
    %cst_22 = arith.constant dense<0.000000e+00> : vector<8xf32>
    %55 = vector.multi_reduction <add>, %54, %cst_22 [1] : vector<8x8xf32> to vector<8xf32>
    %56 = vector.shape_cast %55 : vector<8xf32> to vector<8x1xf32>
    %57 = tpu.reciprocal %56 {approx = true} : vector<8x1xf32> -> vector<8x1xf32>
    %58 = vector.broadcast %57 : vector<8x1xf32> to vector<8x8xf32>
    %59 = arith.mulf %54, %58 : vector<8x8xf32>
    %60 = arith.truncf %59 : vector<8x8xf32> to vector<8x8xbf16>
    %cst_23 = arith.constant dense<0.000000e+00> : vector<8x8xf32>
    %61 = tpu.matmul %60, %48, %cst_23 {dimension_numbers = #tpu.dot_dimension_numbers<[1], [0], [0], [1], [0, 0, 1, 1], [], []>} : vector<8x8xbf16>, vector<8x8xbf16>, vector<8x8xf32> -> vector<8x8xf32>
    %62 = arith.truncf %61 : vector<8x8xf32> to vector<8x8xbf16>
    %c0_24 = arith.constant 0 : index
    %63 = arith.index_cast %41 : i32 to index
    %64 = vector.load %arg17[%c0_24, %63] : memref<8x32xbf16, #tpu.memory_space<vmem>>, vector<8x8xbf16>
    tpu.vector_store %arg17[%c0_24, %63], %62 {strides = array<i32>} : memref<8x32xbf16, #tpu.memory_space<vmem>>, vector<8x8xbf16>,
    %c1_i32 = arith.constant 1 : i32
    %c8_i32_25 = arith.constant 8 : i32
    %65 = arith.muli %c1_i32, %c8_i32_25 : i32
    %c0_26 = arith.constant 0 : index
    %66 = arith.index_cast %65 : i32 to index
    %67 = vector.load %arg16[%c0_26, %66] : memref<8x32xbf16, #tpu.memory_space<vmem>>, vector<8x8xbf16>
    %c0_27 = arith.constant 0 : index
    %68 = arith.index_cast %65 : i32 to index
    %69 = vector.load %arg15[%c0_27, %68] : memref<8x64xbf16, #tpu.memory_space<vmem>>, vector<8x8xbf16>
    %c32_i32_28 = arith.constant 32 : i32
    %70 = arith.addi %c32_i32_28, %65 : i32
    %c0_29 = arith.constant 0 : index
    %71 = arith.index_cast %70 : i32 to index
    %72 = vector.load %arg15[%c0_29, %71] : memref<8x64xbf16, #tpu.memory_space<vmem>>, vector<8x8xbf16>
    %cst_30 = arith.constant dense<0.000000e+00> : vector<8x8xf32>
    %73 = tpu.matmul %67, %69, %cst_30 {dimension_numbers = #tpu.dot_dimension_numbers<[1], [1], [0], [0], [0, 0, 1, 0], [], []>} : vector<8x8xbf16>, vector<8x8xbf16>, vector<8x8xf32> -> vector<8x8xf32>
    %cst_31 = arith.constant dense<0xFF800000> : vector<8xf32>
    %74 = vector.multi_reduction <maximumf>, %73, %cst_31 [1] : vector<8x8xf32> to vector<8xf32>
    %75 = vector.shape_cast %74 : vector<8xf32> to vector<8x1xf32>
    %76 = vector.broadcast %75 : vector<8x1xf32> to vector<8x8xf32>
    %77 = arith.subf %73, %76 : vector<8x8xf32>
    %78 = math.exp %77 : vector<8x8xf32>
    %cst_32 = arith.constant dense<0.000000e+00> : vector<8xf32>
    %79 = vector.multi_reduction <add>, %78, %cst_32 [1] : vector<8x8xf32> to vector<8xf32>
    %80 = vector.shape_cast %79 : vector<8xf32> to vector<8x1xf32>
    %81 = tpu.reciprocal %80 {approx = true} : vector<8x1xf32> -> vector<8x1xf32>
    %82 = vector.broadcast %81 : vector<8x1xf32> to vector<8x8xf32>
    %83 = arith.mulf %78, %82 : vector<8x8xf32>
    %84 = arith.truncf %83 : vector<8x8xf32> to vector<8x8xbf16>
    %cst_33 = arith.constant dense<0.000000e+00> : vector<8x8xf32>
    %85 = tpu.matmul %84, %72, %cst_33 {dimension_numbers = #tpu.dot_dimension_numbers<[1], [0], [0], [1], [0, 0, 1, 1], [], []>} : vector<8x8xbf16>, vector<8x8xbf16>, vector<8x8xf32> -> vector<8x8xf32>
    %86 = arith.truncf %85 : vector<8x8xf32> to vector<8x8xbf16>
    %c0_34 = arith.constant 0 : index
    %87 = arith.index_cast %65 : i32 to index
    %88 = vector.load %arg17[%c0_34, %87] : memref<8x32xbf16, #tpu.memory_space<vmem>>, vector<8x8xbf16>
    tpu.vector_store %arg17[%c0_34, %87], %86 {strides = array<i32>} : memref<8x32xbf16, #tpu.memory_space<vmem>>, vector<8x8xbf16>,
    %c2_i32 = arith.constant 2 : i32
    %c8_i32_35 = arith.constant 8 : i32
    %89 = arith.muli %c2_i32, %c8_i32_35 : i32
    %c0_36 = arith.constant 0 : index
    %90 = arith.index_cast %89 : i32 to index
    %91 = vector.load %arg16[%c0_36, %90] : memref<8x32xbf16, #tpu.memory_space<vmem>>, vector<8x8xbf16>
    %c0_37 = arith.constant 0 : index
    %92 = arith.index_cast %89 : i32 to index
    %93 = vector.load %arg15[%c0_37, %92] : memref<8x64xbf16, #tpu.memory_space<vmem>>, vector<8x8xbf16>
    %c32_i32_38 = arith.constant 32 : i32
    %94 = arith.addi %c32_i32_38, %89 : i32
    %c0_39 = arith.constant 0 : index
    %95 = arith.index_cast %94 : i32 to index
    %96 = vector.load %arg15[%c0_39, %95] : memref<8x64xbf16, #tpu.memory_space<vmem>>, vector<8x8xbf16>
    %cst_40 = arith.constant dense<0.000000e+00> : vector<8x8xf32>
    %97 = tpu.matmul %91, %93, %cst_40 {dimension_numbers = #tpu.dot_dimension_numbers<[1], [1], [0], [0], [0, 0, 1, 0], [], []>} : vector<8x8xbf16>, vector<8x8xbf16>, vector<8x8xf32> -> vector<8x8xf32>
    %cst_41 = arith.constant dense<0xFF800000> : vector<8xf32>
    %98 = vector.multi_reduction <maximumf>, %97, %cst_41 [1] : vector<8x8xf32> to vector<8xf32>
    %99 = vector.shape_cast %98 : vector<8xf32> to vector<8x1xf32>
    %100 = vector.broadcast %99 : vector<8x1xf32> to vector<8x8xf32>
    %101 = arith.subf %97, %100 : vector<8x8xf32>
    %102 = math.exp %101 : vector<8x8xf32>
    %cst_42 = arith.constant dense<0.000000e+00> : vector<8xf32>
    %103 = vector.multi_reduction <add>, %102, %cst_42 [1] : vector<8x8xf32> to vector<8xf32>
    %104 = vector.shape_cast %103 : vector<8xf32> to vector<8x1xf32>
    %105 = tpu.reciprocal %104 {approx = true} : vector<8x1xf32> -> vector<8x1xf32>
    %106 = vector.broadcast %105 : vector<8x1xf32> to vector<8x8xf32>
    %107 = arith.mulf %102, %106 : vector<8x8xf32>
    %108 = arith.truncf %107 : vector<8x8xf32> to vector<8x8xbf16>
    %cst_43 = arith.constant dense<0.000000e+00> : vector<8x8xf32>
    %109 = tpu.matmul %108, %96, %cst_43 {dimension_numbers = #tpu.dot_dimension_numbers<[1], [0], [0], [1], [0, 0, 1, 1], [], []>} : vector<8x8xbf16>, vector<8x8xbf16>, vector<8x8xf32> -> vector<8x8xf32>
    %110 = arith.truncf %109 : vector<8x8xf32> to vector<8x8xbf16>
    %c0_44 = arith.constant 0 : index
    %111 = arith.index_cast %89 : i32 to index
    %112 = vector.load %arg17[%c0_44, %111] : memref<8x32xbf16, #tpu.memory_space<vmem>>, vector<8x8xbf16>
    tpu.vector_store %arg17[%c0_44, %111], %110 {strides = array<i32>} : memref<8x32xbf16, #tpu.memory_space<vmem>>, vector<8x8xbf16>,
    %c3_i32 = arith.constant 3 : i32
    %c8_i32_45 = arith.constant 8 : i32
    %113 = arith.muli %c3_i32, %c8_i32_45 : i32
    %c0_46 = arith.constant 0 : index
    %114 = arith.index_cast %113 : i32 to index
    %115 = vector.load %arg16[%c0_46, %114] : memref<8x32xbf16, #tpu.memory_space<vmem>>, vector<8x8xbf16>
    %c0_47 = arith.constant 0 : index
    %116 = arith.index_cast %113 : i32 to index
    %117 = vector.load %arg15[%c0_47, %116] : memref<8x64xbf16, #tpu.memory_space<vmem>>, vector<8x8xbf16>
    %c32_i32_48 = arith.constant 32 : i32
    %118 = arith.addi %c32_i32_48, %113 : i32
    %c0_49 = arith.constant 0 : index
    %119 = arith.index_cast %118 : i32 to index
    %120 = vector.load %arg15[%c0_49, %119] : memref<8x64xbf16, #tpu.memory_space<vmem>>, vector<8x8xbf16>
    %cst_50 = arith.constant dense<0.000000e+00> : vector<8x8xf32>
    %121 = tpu.matmul %115, %117, %cst_50 {dimension_numbers = #tpu.dot_dimension_numbers<[1], [1], [0], [0], [0, 0, 1, 0], [], []>} : vector<8x8xbf16>, vector<8x8xbf16>, vector<8x8xf32> -> vector<8x8xf32>
    %cst_51 = arith.constant dense<0xFF800000> : vector<8xf32>
    %122 = vector.multi_reduction <maximumf>, %121, %cst_51 [1] : vector<8x8xf32> to vector<8xf32>
    %123 = vector.shape_cast %122 : vector<8xf32> to vector<8x1xf32>
    %124 = vector.broadcast %123 : vector<8x1xf32> to vector<8x8xf32>
    %125 = arith.subf %121, %124 : vector<8x8xf32>
    %126 = math.exp %125 : vector<8x8xf32>
    %cst_52 = arith.constant dense<0.000000e+00> : vector<8xf32>
    %127 = vector.multi_reduction <add>, %126, %cst_52 [1] : vector<8x8xf32> to vector<8xf32>
    %128 = vector.shape_cast %127 : vector<8xf32> to vector<8x1xf32>
    %129 = tpu.reciprocal %128 {approx = true} : vector<8x1xf32> -> vector<8x1xf32>
    %130 = vector.broadcast %129 : vector<8x1xf32> to vector<8x8xf32>
    %131 = arith.mulf %126, %130 : vector<8x8xf32>
    %132 = arith.truncf %131 : vector<8x8xf32> to vector<8x8xbf16>
    %cst_53 = arith.constant dense<0.000000e+00> : vector<8x8xf32>
    %133 = tpu.matmul %132, %120, %cst_53 {dimension_numbers = #tpu.dot_dimension_numbers<[1], [0], [0], [1], [0, 0, 1, 1], [], []>} : vector<8x8xbf16>, vector<8x8xbf16>, vector<8x8xf32> -> vector<8x8xf32>
    %134 = arith.truncf %133 : vector<8x8xf32> to vector<8x8xbf16>
    %c0_54 = arith.constant 0 : index
    %135 = arith.index_cast %113 : i32 to index
    %136 = vector.load %arg17[%c0_54, %135] : memref<8x32xbf16, #tpu.memory_space<vmem>>, vector<8x8xbf16>
    tpu.vector_store %arg17[%c0_54, %135], %134 {strides = array<i32>} : memref<8x32xbf16, #tpu.memory_space<vmem>>, vector<8x8xbf16>,
    %c4_i32 = arith.constant 4 : i32
    %c0_55 = arith.constant 0 : index
    %137 = arith.index_cast %8 : i32 to index
    %c0_56 = arith.constant 0 : index
    %138 = vector.load %arg2[%c0_55, %137, %c0_56] : memref<1x8x32xf32, #tpu.memory_space<vmem>>, vector<1x8x32xf32>
    %139 = vector.shape_cast %138 : vector<1x8x32xf32> to vector<8x32xf32>
    %c0_57 = arith.constant 0 : index
    %c0_58 = arith.constant 0 : index
    %140 = vector.load %arg17[%c0_57, %c0_58] : memref<8x32xbf16, #tpu.memory_space<vmem>>, vector<8x32xbf16>
    %c0_59 = arith.constant 0 : index
    %c0_60 = arith.constant 0 : index
    %141 = vector.load %arg4[%c0_59, %c0_60] : memref<32x32xbf16, #tpu.memory_space<vmem>>, vector<32x32xbf16>
    %cst_61 = arith.constant dense<0.000000e+00> : vector<8x32xf32>
    %142 = tpu.matmul %140, %141, %cst_61 {dimension_numbers = #tpu.dot_dimension_numbers<[1], [0], [0], [1], [0, 0, 1, 1], [], []>} : vector<8x32xbf16>, vector<32x32xbf16>, vector<8x32xf32> -> vector<8x32xf32>
    %143 = arith.addf %139, %142 : vector<8x32xf32>
    %c0_62 = arith.constant 0 : index
    %c0_63 = arith.constant 0 : index
    %144 = vector.load %arg5[%c0_62, %c0_63] : memref<1x32xf32, #tpu.memory_space<vmem>>, vector<1x32xf32>
    %145 = vector.shape_cast %144 : vector<1x32xf32> to vector<32xf32>
    %146 = vector.shape_cast %145 : vector<32xf32> to vector<1x32xf32>
    %147 = vector.broadcast %146 : vector<1x32xf32> to vector<8x32xf32>
    %148 = arith.addf %143, %147 : vector<8x32xf32>
    %c0_64 = arith.constant 0 : index
    %c0_65 = arith.constant 0 : index
    %149 = vector.load %arg12[%c0_64, %c0_65] : memref<1x32xf32, #tpu.memory_space<vmem>>, vector<1x32xf32>
    %150 = vector.shape_cast %149 : vector<1x32xf32> to vector<32xf32>
    %c0_66 = arith.constant 0 : index
    %c0_67 = arith.constant 0 : index
    %151 = vector.load %arg13[%c0_66, %c0_67] : memref<1x32xf32, #tpu.memory_space<vmem>>, vector<1x32xf32>
    %152 = vector.shape_cast %151 : vector<1x32xf32> to vector<32xf32>
    %cst_68 = arith.constant dense<0.000000e+00> : vector<8xf32>
    %153 = vector.multi_reduction <add>, %148, %cst_68 [1] : vector<8x32xf32> to vector<8xf32>
    %154 = vector.shape_cast %153 : vector<8xf32> to vector<8x1xf32>
    %cst_69 = arith.constant 3.200000e+01 : f32
    %155 = vector.broadcast %cst_69 : f32 to vector<8x1xf32>
    %156 = arith.divf %154, %155 : vector<8x1xf32>
    %157 = vector.broadcast %156 : vector<8x1xf32> to vector<8x32xf32>
    %158 = arith.subf %148, %157 : vector<8x32xf32>
    %159 = arith.mulf %158, %158 : vector<8x32xf32>
    %cst_70 = arith.constant dense<0.000000e+00> : vector<8xf32>
    %160 = vector.multi_reduction <add>, %159, %cst_70 [1] : vector<8x32xf32> to vector<8xf32>
    %161 = vector.shape_cast %160 : vector<8xf32> to vector<8x1xf32>
    %cst_71 = arith.constant 3.200000e+01 : f32
    %162 = vector.broadcast %cst_71 : f32 to vector<8x1xf32>
    %163 = arith.divf %161, %162 : vector<8x1xf32>
    %164 = vector.broadcast %156 : vector<8x1xf32> to vector<8x32xf32>
    %165 = arith.subf %148, %164 : vector<8x32xf32>
    %cst_72 = arith.constant 9.99999974E-6 : f32
    %166 = vector.broadcast %cst_72 : f32 to vector<8x1xf32>
    %167 = arith.addf %163, %166 : vector<8x1xf32>
    %168 = math.rsqrt %167 : vector<8x1xf32>
    %169 = vector.broadcast %168 : vector<8x1xf32> to vector<8x32xf32>
    %170 = arith.mulf %165, %169 : vector<8x32xf32>
    %171 = vector.shape_cast %150 : vector<32xf32> to vector<1x32xf32>
    %172 = vector.broadcast %171 : vector<1x32xf32> to vector<8x32xf32>
    %173 = arith.mulf %170, %172 : vector<8x32xf32>
    %174 = vector.shape_cast %152 : vector<32xf32> to vector<1x32xf32>
    %175 = vector.broadcast %174 : vector<1x32xf32> to vector<8x32xf32>
    %176 = arith.addf %173, %175 : vector<8x32xf32>
    %177 = arith.truncf %176 : vector<8x32xf32> to vector<8x32xbf16>
    %c0_73 = arith.constant 0 : index
    %c0_74 = arith.constant 0 : index
    %178 = vector.load %arg8[%c0_73, %c0_74] : memref<32x64xbf16, #tpu.memory_space<vmem>>, vector<32x64xbf16>
    %cst_75 = arith.constant dense<0.000000e+00> : vector<8x64xf32>
    %179 = tpu.matmul %177, %178, %cst_75 {dimension_numbers = #tpu.dot_dimension_numbers<[1], [0], [0], [1], [0, 0, 1, 1], [], []>} : vector<8x32xbf16>, vector<32x64xbf16>, vector<8x64xf32> -> vector<8x64xf32>
    %c0_76 = arith.constant 0 : index
    %c0_77 = arith.constant 0 : index
    %180 = vector.load %arg9[%c0_76, %c0_77] : memref<1x64xf32, #tpu.memory_space<vmem>>, vector<1x64xf32>
    %181 = vector.shape_cast %180 : vector<1x64xf32> to vector<64xf32>
    %182 = vector.shape_cast %181 : vector<64xf32> to vector<1x64xf32>
    %183 = vector.broadcast %182 : vector<1x64xf32> to vector<8x64xf32>
    %184 = arith.addf %179, %183 : vector<8x64xf32>
    %cst_78 = arith.constant 5.000000e-01 : f32
    %185 = vector.broadcast %cst_78 : f32 to vector<8x64xf32>
    %186 = arith.mulf %185, %184 : vector<8x64xf32>
    %cst_79 = arith.constant 4.471500e-02 : f32
    %187 = vector.broadcast %cst_79 : f32 to vector<8x64xf32>
    %188 = arith.mulf %187, %184 : vector<8x64xf32>
    %189 = arith.mulf %188, %184 : vector<8x64xf32>
    %190 = arith.mulf %189, %184 : vector<8x64xf32>
    %191 = arith.addf %184, %190 : vector<8x64xf32>
    %cst_80 = arith.constant 0.797884583 : f32
    %192 = vector.broadcast %cst_80 : f32 to vector<8x64xf32>
    %193 = arith.mulf %192, %191 : vector<8x64xf32>
    %194 = math.tanh %193 : vector<8x64xf32>
    %cst_81 = arith.constant 1.000000e+00 : f32
    %195 = vector.broadcast %cst_81 : f32 to vector<8x64xf32>
    %196 = arith.addf %195, %194 : vector<8x64xf32>
    %197 = arith.mulf %186, %196 : vector<8x64xf32>
    %198 = arith.truncf %197 : vector<8x64xf32> to vector<8x64xbf16>
    %c0_82 = arith.constant 0 : index
    %c0_83 = arith.constant 0 : index
    %199 = vector.load %arg10[%c0_82, %c0_83] : memref<64x32xbf16, #tpu.memory_space<vmem>>, vector<64x32xbf16>
    %cst_84 = arith.constant dense<0.000000e+00> : vector<8x32xf32>
    %200 = tpu.matmul %198, %199, %cst_84 {dimension_numbers = #tpu.dot_dimension_numbers<[1], [0], [0], [1], [0, 0, 1, 1], [], []>} : vector<8x64xbf16>, vector<64x32xbf16>, vector<8x32xf32> -> vector<8x32xf32>
    %201 = arith.addf %148, %200 : vector<8x32xf32>
    %c0_85 = arith.constant 0 : index
    %c0_86 = arith.constant 0 : index
    %202 = vector.load %arg11[%c0_85, %c0_86] : memref<1x32xf32, #tpu.memory_space<vmem>>, vector<1x32xf32>
    %203 = vector.shape_cast %202 : vector<1x32xf32> to vector<32xf32>
    %204 = vector.shape_cast %203 : vector<32xf32> to vector<1x32xf32>
    %205 = vector.broadcast %204 : vector<1x32xf32> to vector<8x32xf32>
    %206 = arith.addf %201, %205 : vector<8x32xf32>
    %c0_87 = arith.constant 0 : index
    %c0_88 = arith.constant 0 : index
    %c0_89 = arith.constant 0 : index
    %207 = vector.load %arg14[%c0_87, %c0_88, %c0_89] : memref<1x8x32xf32, #tpu.memory_space<vmem>>, vector<1x8x32xf32>
    %208 = vector.shape_cast %207 : vector<1x8x32xf32> to vector<8x32xf32>
    %209 = vector.shape_cast %206 : vector<8x32xf32> to vector<1x8x32xf32>
    tpu.vector_store %arg14[%c0_87, %c0_88, %c0_89], %209 {strides = array<i32>} : memref<1x8x32xf32, #tpu.memory_space<vmem>>, vector<1x8x32xf32>,
    return
  }
  func.func @transform_0(%arg0: i32, %arg1: i32) -> (i32, i32, i32) {
    %c0_i32 = arith.constant 0 : i32
    %c0_i32_0 = arith.constant 0 : i32
    %c0_i32_1 = arith.constant 0 : i32
    return %arg0, %c0_i32, %c0_i32_0 : i32, i32, i32
  }
  func.func @transform_1(%arg0: i32, %arg1: i32) -> (i32, i32) {
    %c0_i32 = arith.constant 0 : i32
    %c0_i32_0 = arith.constant 0 : i32
    %c0_i32_1 = arith.constant 0 : i32
    return %c0_i32, %c0_i32_0 : i32, i32
  }
  func.func @transform_2(%arg0: i32, %arg1: i32) -> (i32, i32) {
    %c0_i32 = arith.constant 0 : i32
    %c0_i32_0 = arith.constant 0 : i32
    %c0_i32_1 = arith.constant 0 : i32
    return %c0_i32, %c0_i32_0 : i32, i32
  }
  func.func @transform_3(%arg0: i32, %arg1: i32) -> (i32, i32) {
    %c0_i32 = arith.constant 0 : i32
    %c0_i32_0 = arith.constant 0 : i32
    %c0_i32_1 = arith.constant 0 : i32
    return %c0_i32, %c0_i32_0 : i32, i32
  }
  func.func @transform_4(%arg0: i32, %arg1: i32) -> (i32, i32) {
    %c0_i32 = arith.constant 0 : i32
    %c0_i32_0 = arith.constant 0 : i32
    %c0_i32_1 = arith.constant 0 : i32
    return %c0_i32, %c0_i32_0 : i32, i32
  }
  func.func @transform_5(%arg0: i32, %arg1: i32) -> (i32, i32) {
    %c0_i32 = arith.constant 0 : i32
    %c0_i32_0 = arith.constant 0 : i32
    %c0_i32_1 = arith.constant 0 : i32
    return %c0_i32, %c0_i32_0 : i32, i32
  }
  func.func @transform_6(%arg0: i32, %arg1: i32) -> (i32, i32) {
    %c0_i32 = arith.constant 0 : i32
    %c0_i32_0 = arith.constant 0 : i32
    %c0_i32_1 = arith.constant 0 : i32
    return %c0_i32, %c0_i32_0 : i32, i32
  }
  func.func @transform_7(%arg0: i32, %arg1: i32) -> (i32, i32) {
    %c0_i32 = arith.constant 0 : i32
    %c0_i32_0 = arith.constant 0 : i32
    %c0_i32_1 = arith.constant 0 : i32
    return %c0_i32, %c0_i32_0 : i32, i32
  }
  func.func @transform_8(%arg0: i32, %arg1: i32) -> (i32, i32) {
    %c0_i32 = arith.constant 0 : i32
    %c0_i32_0 = arith.constant 0 : i32
    %c0_i32_1 = arith.constant 0 : i32
    return %c0_i32, %c0_i32_0 : i32, i32
  }
  func.func @transform_9(%arg0: i32, %arg1: i32) -> (i32, i32) {
    %c0_i32 = arith.constant 0 : i32
    %c0_i32_0 = arith.constant 0 : i32
    %c0_i32_1 = arith.constant 0 : i32
    return %c0_i32, %c0_i32_0 : i32, i32
  }
  func.func @transform_10(%arg0: i32, %arg1: i32) -> (i32, i32) {
    %c0_i32 = arith.constant 0 : i32
    %c0_i32_0 = arith.constant 0 : i32
    %c0_i32_1 = arith.constant 0 : i32
    return %c0_i32, %c0_i32_0 : i32, i32
  }
  func.func @transform_11(%arg0: i32, %arg1: i32) -> (i32, i32) {
    %c0_i32 = arith.constant 0 : i32
    %c0_i32_0 = arith.constant 0 : i32
    %c0_i32_1 = arith.constant 0 : i32
    return %c0_i32, %c0_i32_0 : i32, i32
  }
  func.func @transform_12(%arg0: i32, %arg1: i32) -> (i32, i32, i32) {
    %c0_i32 = arith.constant 0 : i32
    %c0_i32_0 = arith.constant 0 : i32
    return %arg0, %arg1, %c0_i32 : i32, i32, i32
  }
}

</mosaic_0001>

<bundles_post_ra>
// kernel: tpu_custom_call.1
= control target key start
LH: loop header
LB: loop body
LE: loop exit
PB: predicated region body
PF: predicated region fallthrough
CT: control target
= control target key end

     0   :  { %s3379_s0 = inlined_call_operand.hbm [shape: f32[2,8,32], index: 0, kind: input, shape index: {}]   ;;  %s3380_s1 = inlined_call_operand.hbm [shape: bf16[32,96], index: 1, kind: input, shape index: {}]   ;;  %s3381_s2 = inlined_call_operand.hbm [shape: bf16[32,32], index: 2, kind: input, shape index: {}]   ;;  %s3382_s3 = inlined_call_operand.hbm [shape: f32[1,32], index: 3, kind: input, shape index: {}]   ;;  %s3383_s4 = inlined_call_operand.hbm [shape: f32[1,32], index: 4, kind: input, shape index: {}]   ;;  %s3384_s5 = inlined_call_operand.hbm [shape: f32[1,32], index: 5, kind: input, shape index: {}]   ;;  %s3385_s6 = inlined_call_operand.hbm [shape: bf16[32,64], index: 6, kind: input, shape index: {}]   ;;  %s3386_s7 = inlined_call_operand.hbm [shape: f32[1,64], index: 7, kind: input, shape index: {}]   ;;  %s3387_s8 = inlined_call_operand.hbm [shape: bf16[64,32], index: 8, kind: input, shape index: {}]   ;;  %s3388_s9 = inlined_call_operand.hbm [shape: f32[1,32], index: 9, kind: input, shape index: {}]   ;;  %s3389_s10 = inlined_call_operand.hbm [shape: f32[1,32], index: 10, kind: input, shape index: {}]   ;;  %s3390_s11 = inlined_call_operand.hbm [shape: f32[1,32], index: 11, kind: input, shape index: {}]   ;;  %s3391_s12 = inlined_call_operand.hbm [shape: f32[2,8,32], index: 12, kind: output, shape index: {}]  }
   0x1   :  { %3406 = sst [smem:[#allocation38_spill]] %s3379_s0 }
   0x2   :  { %3407 = sst [smem:[#allocation39_spill]] %s3380_s1 }
   0x3   :  { %3408 = sst [smem:[#allocation40_spill]] %s3381_s2 }
   0x4   :  { %3409 = sst [smem:[#allocation41_spill]] %s3382_s3 }
   0x5   :  { %3410 = sst [smem:[#allocation42_spill]] %s3391_s12 }
   0x6   :  { %17 = vsyncpa [#allocation6], 0 }
   0x7   :  { %19 = vsyncpa [#allocation6 + $0x1], 0 }
   0x8   :  { %20 = vsyncpa [#allocation9], 0 }
   0x9   :  { %21 = vsyncpa [#allocation12], 0 }
   0xa   :  { %22 = vsyncpa [#allocation15], 0 }
   0xb   :  { %23 = vsyncpa [#allocation18], 0 }
   0xc   :  { %24 = vsyncpa [#allocation21], 0 }
   0xd   :  { %25 = vsyncpa [#allocation24], 0 }
   0xe   :  { %26 = vsyncpa [#allocation7], 0 }
   0xf   :  { %28 = vsyncpa [#allocation7 + $0x1], 0  ;;  %s2812_s21 = smov 0   ;;  %s2814_s22 = smov 0  }
  0x10   :  { %s2816_s23 = smov 0   ;;  %s2818_s24 = smov 0  }
  0x11   :  { %s2820_s25 = smov 0   ;;  %s2822_s26 = smov 0  }
  0x12 LB: > { %3411 = sst [smem:[#allocation34_spill]] %s2696_s21  ;;  %s3392_s27 = sadd.s32 4294967295, %s2716_s26   ;;  %s2716_s26 = sphi %s2822_s26, %s34_s26   ;;  %s2712_s25 = sphi %s2820_s25, %s3449_s25   ;;  %s2708_s24 = sphi %s2818_s24, %s3448_s24   ;;  %s2704_s23 = sphi %s2816_s23, %s3447_s23   ;;  %s2700_s22 = sphi %s2814_s22, %s3446_s22   ;;  %s2696_s21 = sphi %s2812_s21, %s3445_s21  }
  0x13   : > { %3412 = sst [smem:[#allocation35_spill]] %s2708_s24  ;;  %p1819_p0 = scmp.ge.s32.totalorder %s2716_s26, 1 }
  0x14   : > { %p2846_p1 = scmp.eq.s32.totalorder %s3392_s27, 0  ;;  %p336_p2 = scmp.lt.s32.totalorder %s2716_s26, 3 }
  0x15   : > { %s2718_s30 = smov [#allocation8]   ;;  %s2719_s15 = smov [#allocation11]  }
  0x16   : > { %s3413_s28 = scalar_select %p2846_p1, 1, 0 }
  0x17   : > { %p2851_p3 = pnand %p1819_p0, %p336_p2  ;;  %s348_s13 = sshll.u32 %s2718_s30, 4  ;;  %s2855_s13 = int_to_ptr.vmem [resolvable:$true] %s348_s13 }
  0x18   : > { %3414 = sst [smem:[#allocation36_spill]] %s3413_s28  ;;  %s375_s16 = sshll.u32 %s2719_s15, 4  ;;  %s2866_s16 = int_to_ptr.vmem [resolvable:$true] %s375_s16 }
  0x19   : > { %s3415_s29 = scalar_select %p2851_p3, 1, 0 }
  0x1a   : > { %p2086_p4 = pneg %p2851_p3  ;;  %s2720_s17 = smov [#allocation14]  }
  0x1b   : > { %3416 = sst [smem:[#allocation37_spill]] %s3415_s29  ;;  %s2868_s18 = sshll.u32 %s2720_s17, 4  ;;  %s398_s18 = int_to_ptr.vmem [resolvable:$true] %s2868_s18 }
  0x1c   : > { %p2862_p6 = pnand %p2086_p4, %p2846_p1  ;;  %s3418_s1 = sld [smem:[#allocation39_spill]] }
  0x1e   : > { %p2878_p8 = pneg %p2862_p6 }
  0x22   : > { %s2272_s30 = scalar_lea.hbm %s3418_s1, 256 }
  0x23   : > { %p2273_p7 = scmp.ne.s32.totalorder %s3418_s1, %s2272_s30  ;;  %p2279_p11 = scmp.lt.u32.totalorder %s2272_s30, %s3418_s1 }
  0x25   : > { %p2275_p9 = pnand %p2878_p8, %p2273_p7 }
  0x27   : > { %p2276_p10 = pneg %p2275_p9 }
  0x29   : > { %p2281_p12 = pnand %p2279_p11, %p2276_p10 }
  0x2b   : > { %2284 = shalt.err (!%p2281_p12)
}
  0x2c   : > { %s2285_s12 = scalar_lea.vmem %s2855_s13, 256  ;;  %p2293_p4 = scmp.lt.s32.totalorder %s2855_s13, %s2855_s13 }
  0x2d   : > { %p2286_p13 = scmp.ne.s32.totalorder %s2855_s13, %s2285_s12  ;;  %p2294_p5 = scmp.lt.s32.totalorder %s2285_s12, %s2285_s12 }
  0x2f   : > { %p2288_p0 = pnand %p2286_p13, %p2878_p8  ;;  %p2295_p7 = por %p2294_p5, %p2293_p4 }
  0x31   : > { %p2289_p2 = pneg %p2288_p0 }
  0x33   : > { %p2296_p9 = pnand %p2295_p7, %p2289_p2 }
  0x35   : > { %2299 = shalt.err (!%p2296_p9)
}
  0x36   : > { %s3401_s27 = smov 64   ;;  %s3403_s19 = smov 4  }
  0x37   : > { %2089 = dma.hbm_to_vmem [thread:$0]  (!%p2862_p6), %s3418_s1, 256, %s2855_s13, [#allocation9], %s3401_s27, %s3401_s27, %s3403_s19  }
  0x38   : > { %s3420_s3 = sld [smem:[#allocation41_spill]] }
  0x3e   : > { %s2300_s12 = scalar_lea.hbm %s3420_s3, 16 }
  0x3f   : > { %p2301_p5 = scmp.ne.s32.totalorder %s3420_s3, %s2300_s12  ;;  %p2307_p12 = scmp.lt.u32.totalorder %s2300_s12, %s3420_s3 }
  0x41   : > { %p2303_p10 = pnand %p2301_p5, %p2878_p8 }
  0x43   : > { %p2304_p11 = pneg %p2303_p10 }
  0x45   : > { %p2309_p13 = pnand %p2307_p12, %p2304_p11 }
  0x47   : > { %2312 = shalt.err (!%p2309_p13)
}
  0x48   : > { %s2313_s13 = scalar_lea.vmem %s2866_s16, 16  ;;  %s2320_s0 = scalar_lea.vmem %s2866_s16, 32 }
  0x49   : > { %p2314_p0 = scmp.ne.s32.totalorder %s2866_s16, %s2313_s13  ;;  %p2321_p7 = scmp.lt.s32.totalorder %s2866_s16, %s2866_s16 }
  0x4a   : > { %p2322_p9 = scmp.lt.s32.totalorder %s2320_s0, %s2313_s13 }
  0x4b   : > { %p2316_p2 = pnand %p2314_p0, %p2878_p8 }
  0x4c   : > { %p2323_p5 = por %p2322_p9, %p2321_p7 }
  0x4d   : > { %p2317_p4 = pneg %p2316_p2 }
  0x4f   : > { %p2324_p10 = pnand %p2323_p5, %p2317_p4 }
  0x51   : > { %2327 = shalt.err (!%p2324_p10)
}
  0x52   : > { %2095 = dma.hbm_to_vmem [thread:$0]  (!%p2862_p6), %s3420_s3, 16, %s2866_s16, [#allocation12]  }
  0x53   : > { %s2328_s30 = scalar_lea.hbm %s3384_s5, 16 }
  0x54   : > { %p2329_p11 = scmp.ne.s32.totalorder %s3384_s5, %s2328_s30  ;;  %p2335_p0 = scmp.lt.u32.totalorder %s2328_s30, %s3384_s5 }
  0x56   : > { %p2331_p12 = pnand %p2329_p11, %p2878_p8 }
  0x58   : > { %p2332_p13 = pneg %p2331_p12 }
  0x5a   : > { %p2337_p2 = pnand %p2335_p0, %p2332_p13 }
  0x5c   : > { %2340 = shalt.err (!%p2337_p2)
}
  0x5d   : > { %s2341_s0 = scalar_lea.vmem %s398_s18, 16  ;;  %s2348_s16 = scalar_lea.vmem %s398_s18, 32 }
  0x5e   : > { %p2342_p4 = scmp.ne.s32.totalorder %s398_s18, %s2341_s0  ;;  %p2349_p5 = scmp.lt.s32.totalorder %s398_s18, %s398_s18 }
  0x5f   : > { %p2350_p10 = scmp.lt.s32.totalorder %s2348_s16, %s2341_s0 }
  0x60   : > { %p2344_p7 = pnand %p2342_p4, %p2878_p8 }
  0x61   : > { %p2351_p3 = por %p2350_p10, %p2349_p5 }
  0x62   : > { %p2345_p9 = pneg %p2344_p7 }
  0x64   : > { %p2352_p1 = pnand %p2351_p3, %p2345_p9 }
  0x66   : > { %2355 = shalt.err (!%p2352_p1)
}
  0x67   : > { %2101 = dma.hbm_to_vmem [thread:$0]  (!%p2862_p6), %s3384_s5, 16, %s398_s18, [#allocation15]  }
  0x68   : > { %s2723_s29 = smov [#allocation17]   ;;  %s2724_s30 = smov [#allocation20]  }
  0x69   : > { %s421_s20 = sshll.u32 %s2723_s29, 4  ;;  %s445_s15 = sshll.u32 %s2724_s30, 4  ;;  %s422_s20 = int_to_ptr.vmem [resolvable:$true] %s421_s20  ;;  %s446_s15 = int_to_ptr.vmem [resolvable:$true] %s445_s15 }
  0x6a   : > { %s2356_s13 = scalar_lea.hbm %s3386_s7, 16 }
  0x6b   : > { %p2357_p1 = scmp.ne.s32.totalorder %s3386_s7, %s2356_s13  ;;  %p2363_p12 = scmp.lt.u32.totalorder %s2356_s13, %s3386_s7 }
  0x6d   : > { %p2359_p3 = pnand %p2357_p1, %p2878_p8 }
  0x6f   : > { %p2360_p11 = pneg %p2359_p3 }
  0x71   : > { %p2365_p13 = pnand %p2363_p12, %p2360_p11 }
  0x73   : > { %2368 = shalt.err (!%p2365_p13)
}
  0x74   : > { %s2369_s18 = scalar_lea.vmem %s422_s20, 16  ;;  %s2376_s28 = scalar_lea.vmem %s422_s20, 32 }
  0x75   : > { %p2370_p0 = scmp.ne.s32.totalorder %s422_s20, %s2369_s18  ;;  %p2377_p7 = scmp.lt.s32.totalorder %s422_s20, %s422_s20 }
  0x76   : > { %p2378_p9 = scmp.lt.s32.totalorder %s2376_s28, %s2369_s18 }
  0x77   : > { %p2372_p2 = pnand %p2370_p0, %p2878_p8 }
  0x78   : > { %p2379_p5 = por %p2378_p9, %p2377_p7 }
  0x79   : > { %p2373_p4 = pneg %p2372_p2 }
  0x7b   : > { %p2380_p10 = pnand %p2379_p5, %p2373_p4 }
  0x7d   : > { %2383 = shalt.err (!%p2380_p10)
}
  0x7e   : > { %2107 = dma.hbm_to_vmem [thread:$0]  (!%p2862_p6), %s3386_s7, 16, %s422_s20, [#allocation18]  }
  0x7f   : > { %s2384_s12 = scalar_lea.hbm %s3388_s9, 16 }
  0x80   : > { %p2385_p1 = scmp.ne.s32.totalorder %s3388_s9, %s2384_s12  ;;  %p2391_p12 = scmp.lt.u32.totalorder %s2384_s12, %s3388_s9 }
  0x82   : > { %p2387_p3 = pnand %p2385_p1, %p2878_p8 }
  0x84   : > { %p2388_p11 = pneg %p2387_p3 }
  0x86   : > { %p2393_p13 = pnand %p2391_p12, %p2388_p11 }
  0x88   : > { %2396 = shalt.err (!%p2393_p13)
}
  0x89   : > { %s2397_s18 = scalar_lea.vmem %s446_s15, 16  ;;  %s2404_s20 = scalar_lea.vmem %s446_s15, 32 }
  0x8a   : > { %p2398_p0 = scmp.ne.s32.totalorder %s446_s15, %s2397_s18  ;;  %p2405_p7 = scmp.lt.s32.totalorder %s446_s15, %s446_s15 }
  0x8b   : > { %p2406_p9 = scmp.lt.s32.totalorder %s2404_s20, %s2397_s18 }
  0x8c   : > { %p2400_p2 = pnand %p2398_p0, %p2878_p8 }
  0x8d   : > { %p2407_p5 = por %p2406_p9, %p2405_p7 }
  0x8e   : > { %p2401_p4 = pneg %p2400_p2 }
  0x90   : > { %p2408_p10 = pnand %p2407_p5, %p2401_p4 }
  0x92   : > { %2411 = shalt.err (!%p2408_p10)
}
  0x93   : > { %2113 = dma.hbm_to_vmem [thread:$0]  (!%p2862_p6), %s3388_s9, 16, %s446_s15, [#allocation21]  }
  0x94   : > { %s2725_s30 = smov [#allocation10]   ;;  %s2726_s17 = smov [#allocation13]  }
  0x95   : > { %s361_s27 = sshll.u32 %s2725_s30, 4  ;;  %s386_s12 = sshll.u32 %s2726_s17, 4  ;;  %s362_s27 = int_to_ptr.vmem [resolvable:$true] %s361_s27  ;;  %s387_s12 = int_to_ptr.vmem [resolvable:$true] %s386_s12 }
  0x96   : > { %s3421_s2 = sld [smem:[#allocation40_spill]] }
  0x9c   : > { %s2412_s16 = scalar_lea.hbm %s3421_s2, 256 }
  0x9d   : > { %p2413_p1 = scmp.ne.s32.totalorder %s3421_s2, %s2412_s16  ;;  %p2419_p12 = scmp.lt.u32.totalorder %s2412_s16, %s3421_s2 }
  0x9f   : > { %p2415_p3 = pnand %p2413_p1, %p2878_p8 }
  0xa1   : > { %p2416_p11 = pneg %p2415_p3 }
  0xa3   : > { %p2421_p13 = pnand %p2419_p12, %p2416_p11 }
  0xa5   : > { %2424 = shalt.err (!%p2421_p13)
}
  0xa6   : > { %s2425_s15 = scalar_lea.vmem %s362_s27, 256  ;;  %p2433_p7 = scmp.lt.s32.totalorder %s362_s27, %s362_s27 }
  0xa7   : > { %p2426_p0 = scmp.ne.s32.totalorder %s362_s27, %s2425_s15  ;;  %p2434_p9 = scmp.lt.s32.totalorder %s2425_s15, %s2425_s15 }
  0xa9   : > { %p2428_p2 = pnand %p2426_p0, %p2878_p8  ;;  %p2435_p5 = por %p2434_p9, %p2433_p7 }
  0xab   : > { %p2429_p4 = pneg %p2428_p2 }
  0xad   : > { %p2436_p10 = pnand %p2435_p5, %p2429_p4 }
  0xaf   : > { %2439 = shalt.err (!%p2436_p10)
}
  0xb0   : > { %s3422_s29 = smov 64   ;;  %s2440_s16 = scalar_lea.hbm %s3383_s4, 16 }
  0xb1   : > { %2092 = dma.hbm_to_vmem [thread:$0]  (!%p2862_p6), %s3421_s2, 256, %s362_s27, [#allocation9], %s3422_s29, %s3422_s29, %s3403_s19  }
  0xb2   : > { %p2441_p1 = scmp.ne.s32.totalorder %s3383_s4, %s2440_s16  ;;  %p2447_p12 = scmp.lt.u32.totalorder %s2440_s16, %s3383_s4 }
  0xb4   : > { %p2443_p3 = pnand %p2441_p1, %p2878_p8 }
  0xb6   : > { %p2444_p11 = pneg %p2443_p3 }
  0xb8   : > { %p2449_p13 = pnand %p2447_p12, %p2444_p11 }
  0xba   : > { %2452 = shalt.err (!%p2449_p13)
}
  0xbb   : > { %s2453_s15 = scalar_lea.vmem %s387_s12, 16  ;;  %s2460_s27 = scalar_lea.vmem %s387_s12, 32 }
  0xbc   : > { %p2454_p0 = scmp.ne.s32.totalorder %s387_s12, %s2453_s15  ;;  %p2461_p7 = scmp.lt.s32.totalorder %s387_s12, %s387_s12 }
  0xbd   : > { %p2462_p9 = scmp.lt.s32.totalorder %s2460_s27, %s2453_s15 }
  0xbe   : > { %p2456_p2 = pnand %p2454_p0, %p2878_p8 }
  0xbf   : > { %p2463_p5 = por %p2462_p9, %p2461_p7 }
  0xc0   : > { %p2457_p4 = pneg %p2456_p2 }
  0xc2   : > { %p2464_p10 = pnand %p2463_p5, %p2457_p4 }
  0xc4   : > { %2467 = shalt.err (!%p2464_p10)
}
  0xc5   : > { %2098 = dma.hbm_to_vmem [thread:$0]  (!%p2862_p6), %s3383_s4, 16, %s387_s12, [#allocation12]  }
  0xc6   : > { %s2727_s13 = smov [#allocation16]   ;;  %s2728_s16 = smov [#allocation19]  }
  0xc7   : > { %s407_s0 = sshll.u32 %s2727_s13, 4  ;;  %s431_s21 = sshll.u32 %s2728_s16, 4  ;;  %s408_s0 = int_to_ptr.vmem [resolvable:$true] %s407_s0  ;;  %s432_s21 = int_to_ptr.vmem [resolvable:$true] %s431_s21 }
  0xc8   : > { %s2468_s28 = scalar_lea.hbm %s3385_s6, 256 }
  0xc9   : > { %p2469_p1 = scmp.ne.s32.totalorder %s3385_s6, %s2468_s28  ;;  %p2475_p12 = scmp.lt.u32.totalorder %s2468_s28, %s3385_s6 }
  0xcb   : > { %p2471_p3 = pnand %p2469_p1, %p2878_p8 }
  0xcd   : > { %p2472_p11 = pneg %p2471_p3 }
  0xcf   : > { %p2477_p13 = pnand %p2475_p12, %p2472_p11 }
  0xd1   : > { %2480 = shalt.err (!%p2477_p13)
}
  0xd2   : > { %s2481_s12 = scalar_lea.vmem %s408_s0, 256  ;;  %p2489_p7 = scmp.lt.s32.totalorder %s408_s0, %s408_s0 }
  0xd3   : > { %p2482_p0 = scmp.ne.s32.totalorder %s408_s0, %s2481_s12  ;;  %p2490_p9 = scmp.lt.s32.totalorder %s2481_s12, %s2481_s12 }
  0xd5   : > { %p2484_p2 = pnand %p2482_p0, %p2878_p8  ;;  %p2491_p5 = por %p2490_p9, %p2489_p7 }
  0xd7   : > { %p2485_p4 = pneg %p2484_p2 }
  0xd9   : > { %p2492_p10 = pnand %p2491_p5, %p2485_p4 }
  0xdb   : > { %2495 = shalt.err (!%p2492_p10)
}
  0xdc   : > { %s3423_s17 = smov 4   ;;  %s2496_s20 = scalar_lea.hbm %s3387_s8, 512 }
  0xdd   : > { %2104 = dma.hbm_to_vmem [thread:$0]  (!%p2862_p6), %s3385_s6, 256, %s408_s0, [#allocation15], %s3422_s29, %s3422_s29, %s3423_s17  }
  0xde   : > { %p2497_p1 = scmp.ne.s32.totalorder %s3387_s8, %s2496_s20  ;;  %p2503_p12 = scmp.lt.u32.totalorder %s2496_s20, %s3387_s8 }
  0xe0   : > { %p2499_p3 = pnand %p2497_p1, %p2878_p8 }
  0xe2   : > { %p2500_p11 = pneg %p2499_p3 }
  0xe4   : > { %p2505_p13 = pnand %p2503_p12, %p2500_p11 }
  0xe6   : > { %2508 = shalt.err (!%p2505_p13)
}
  0xe7   : > { %s2509_s12 = scalar_lea.vmem %s432_s21, 512  ;;  %p2517_p7 = scmp.lt.s32.totalorder %s432_s21, %s432_s21 }
  0xe8   : > { %p2510_p0 = scmp.ne.s32.totalorder %s432_s21, %s2509_s12  ;;  %p2518_p9 = scmp.lt.s32.totalorder %s2509_s12, %s2509_s12 }
  0xea   : > { %p2512_p2 = pnand %p2510_p0, %p2878_p8  ;;  %p2519_p5 = por %p2518_p9, %p2517_p7 }
  0xec   : > { %p2513_p4 = pneg %p2512_p2 }
  0xee   : > { %p2520_p10 = pnand %p2519_p5, %p2513_p4 }
  0xf0   : > { %2523 = shalt.err (!%p2520_p10)
}
  0xf1   : > { %2110 = dma.hbm_to_vmem [thread:$0]  (!%p2862_p6), %s3387_s8, 512, %s432_s21, [#allocation18], %s3422_s29, %s3422_s29, %s3423_s17  }
  0xf2   : > { %s2729_s13 = smov [#allocation22]   ;;  %s2730_s18 = smov [#allocation23]  }
  0xf3   : > { %s456_s16 = sshll.u32 %s2729_s13, 4  ;;  %s467_s20 = sshll.u32 %s2730_s18, 4  ;;  %s457_s16 = int_to_ptr.vmem [resolvable:$true] %s456_s16  ;;  %s468_s20 = int_to_ptr.vmem [resolvable:$true] %s467_s20 }
  0xf4   : > { %s2524_s27 = scalar_lea.hbm %s3389_s10, 16 }
  0xf5   : > { %p2525_p1 = scmp.ne.s32.totalorder %s3389_s10, %s2524_s27  ;;  %p2531_p12 = scmp.lt.u32.totalorder %s2524_s27, %s3389_s10 }
  0xf7   : > { %p2527_p3 = pnand %p2525_p1, %p2878_p8 }
  0xf9   : > { %p2528_p11 = pneg %p2527_p3 }
  0xfb   : > { %p2533_p13 = pnand %p2531_p12, %p2528_p11 }
  0xfd   : > { %2536 = shalt.err (!%p2533_p13)
}
  0xfe   : > { %s2537_s29 = scalar_lea.vmem %s457_s16, 16  ;;  %s2544_s21 = scalar_lea.vmem %s457_s16, 32 }
  0xff   : > { %p2538_p0 = scmp.ne.s32.totalorder %s457_s16, %s2537_s29  ;;  %p2545_p7 = scmp.lt.s32.totalorder %s457_s16, %s457_s16 }
 0x100   : > { %p2546_p9 = scmp.lt.s32.totalorder %s2544_s21, %s2537_s29 }
 0x101   : > { %p2540_p2 = pnand %p2538_p0, %p2878_p8 }
 0x102   : > { %p2547_p5 = por %p2546_p9, %p2545_p7 }
 0x103   : > { %p2541_p4 = pneg %p2540_p2 }
 0x105   : > { %p2548_p10 = pnand %p2547_p5, %p2541_p4 }
 0x107   : > { %2551 = shalt.err (!%p2548_p10)
}
 0x108   : > { %2116 = dma.hbm_to_vmem [thread:$0]  (!%p2862_p6), %s3389_s10, 16, %s457_s16, [#allocation21]  }
 0x109   : > { %s2552_s18 = scalar_lea.hbm %s3390_s11, 16 }
 0x10a   : > { %p2553_p1 = scmp.ne.s32.totalorder %s3390_s11, %s2552_s18  ;;  %p2559_p12 = scmp.lt.u32.totalorder %s2552_s18, %s3390_s11 }
 0x10c   : > { %p2555_p3 = pnand %p2553_p1, %p2878_p8 }
 0x10e   : > { %p2556_p11 = pneg %p2555_p3 }
 0x110   : > { %p2561_p13 = pnand %p2559_p12, %p2556_p11 }
 0x112   : > { %2564 = shalt.err (!%p2561_p13)
}
 0x113   : > { %s2565_s12 = scalar_lea.vmem %s468_s20, 16  ;;  %s2572_s16 = scalar_lea.vmem %s468_s20, 32 }
 0x114   : > { %p2566_p0 = scmp.ne.s32.totalorder %s468_s20, %s2565_s12  ;;  %p2573_p7 = scmp.lt.s32.totalorder %s468_s20, %s468_s20 }
 0x115   : > { %p2574_p9 = scmp.lt.s32.totalorder %s2572_s16, %s2565_s12 }
 0x116   : > { %p2568_p2 = pnand %p2566_p0, %p2878_p8 }
 0x117   : > { %p2575_p5 = por %p2574_p9, %p2573_p7 }
 0x118   : > { %p2569_p4 = pneg %p2568_p2 }
 0x11a   : > { %p2576_p10 = pnand %p2575_p5, %p2569_p4 }
 0x11c   : > { %2579 = shalt.err (!%p2576_p10)
}
 0x11d   : > { %s3424_s24 = sld [smem:[#allocation34_spill]]  ;;  %s3425_s21 = sld [smem:[#allocation36_spill]] }
 0x11e   : > { %2119 = dma.hbm_to_vmem [thread:$0]  (!%p2862_p6), %s3390_s11, 16, %s468_s20, [#allocation24]  }
 0x11f   : > { %s1818_s17 = sadd.s32 4294967294, %s2716_s26   ;;  %s46_s19 = sadd.s32 1, %s2712_s25 }
 0x120   : > { %s53_s14 = sadd.s32 1, %s2704_s23  ;;  %p48_p8 = scmp.ge.s32.totalorder %s46_s19, 2 }
 0x121   : > { %p60_p1 = scmp.ne.s32.totalorder %s2704_s23, %s2700_s22  ;;  %p61_p3 = scmp.eq.s32.totalorder %s2716_s26, 0 }
 0x122   : > { %s3451_s19 = smov (%p48_p8, %s46_s19), 0  ;;  %s3429_s18 = sadd.s32 4294967295, %s2716_s26  }
 0x123   : > { %p66_p11 = scmp.ne.s32.totalorder %s2700_s22, %s3424_s24  ;;  %p3108_p12 = por %p61_p3, %p60_p1 }
 0x124   : > { %p3427_p13 = scmp.ne.s32.totalorder %s3425_s21, 0  ;;  %s50_s13 = ssub.s32 %s2712_s25, %s3451_s19 }
 0x125   : > { %p323_p0 = scmp.eq.s32.totalorder %s3429_s18, 1  ;;  %p51_p2 = scmp.eq.s32.totalorder %s50_s13, 0 }
 0x126   : > { %p3114_p6 = por %p3427_p13, %p66_p11  ;;  %p329_p4 = scmp.eq.s32.totalorder %s1818_s17, 1 }
 0x127   : > { %p3122_p7 = por %p323_p0, %p60_p1  ;;  %p2139_p9 = scmp.lt.s32.totalorder %s2716_s26, 2 }
 0x128   : > { %s3128_s15 = scalar_select %p51_p2, %s2704_s23, %s53_s14  }
 0x129   : > { %s3430_s28 = scalar_select %p3122_p7, 1, 0 }
 0x12a   : > { %p3130_p5 = por %p329_p4, %p66_p11  ;;  %s478_s30 = sand.u32 1, %s2704_s23  }
 0x12b   : > { %s1832_s12 = sshll.u32 %s478_s30, 3  ;;  %s1833_s16 = sshll.u32 %s2712_s25, 7 }
 0x12c   : > { %s3431_s27 = scalar_select %p3130_p5, 1, 0 }
 0x12d   : > { %s3432_s24 = sld [smem:[#allocation38_spill]]  ;;  %s482_s17 = scalar_lea.vmem [#allocation5], %s1832_s12 }
 0x12e   : > { %s489_s13 = sshll.u32 %s482_s17, 4  ;;  %p3145_p10 = pnand %p2139_p9, %p3108_p12  ;;  %s3141_s13 = int_to_ptr.vmem [resolvable:$true] %s489_s13 }
 0x12f   : > { %s479_s18 = scalar_lea.sflag [#allocation6], %s478_s30 }
 0x130   : > { %p2582_p1 = pneg %p3145_p10 }
 0x133   : > { %s3433_s2 = smov %s3432_s24  ;;  %s3139_s21 = scalar_lea.hbm %s3432_s24, %s1833_s16 }
 0x134   : > { %s2580_s3 = scalar_lea.hbm %s3139_s21, 128  ;;  %s2585_s0 = scalar_lea.hbm %s3433_s2, 256 }
 0x135   : > { %p2581_p8 = scmp.ne.s32.totalorder %s3139_s21, %s2580_s3  ;;  %p2586_p12 = scmp.lt.u32.totalorder %s3139_s21, %s3433_s2 }
 0x136   : > { %p2587_p13 = scmp.lt.u32.totalorder %s2585_s0, %s2580_s3  ;;  %p2589_p2 = scmp.lt.u32.totalorder %s2580_s3, %s3139_s21 }
 0x137   : > { %p2583_p3 = pnand %p2582_p1, %p2581_p8 }
 0x138   : > { %p2588_p0 = por %p2587_p13, %p2586_p12 }
 0x139   : > { %p2584_p11 = pneg %p2583_p3 }
 0x13a   : > { %p2590_p4 = por %p2589_p2, %p2588_p0 }
 0x13c   : > { %p2591_p9 = pnand %p2590_p4, %p2584_p11 }
 0x13e   : > { %2594 = shalt.err (!%p2591_p9)
}
 0x13f   : > { %s2595_s30 = scalar_lea.vmem %s3141_s13, 128  ;;  %s2731_s24 = smov [#allocation5]  }
 0x140   : > { %p2596_p8 = scmp.ne.s32.totalorder %s3141_s13, %s2595_s30  ;;  %s2600_s17 = sshll.u32 %s2731_s24, 4  ;;  %s2601_s17 = int_to_ptr.vmem [resolvable:$false] %s2600_s17 }
 0x141   : > { %s2602_s12 = scalar_lea.vmem %s2601_s17, 256  ;;  %p2603_p7 = scmp.lt.s32.totalorder %s3141_s13, %s2601_s17 }
 0x142   : > { %p2598_p3 = pnand %p2596_p8, %p2582_p1  ;;  %p2604_p12 = scmp.lt.s32.totalorder %s2602_s12, %s2595_s30 }
 0x144   : > { %p2599_p5 = pneg %p2598_p3  ;;  %p2605_p13 = por %p2604_p12, %p2603_p7 }
 0x146   : > { %p2606_p0 = pnand %p2605_p13, %p2599_p5 }
 0x148   : > { %2609 = shalt.err (!%p2606_p0)
}
 0x149   : > { %2123 = dma.hbm_to_vmem [thread:$0]  (!%p3145_p10), %s3139_s21, 128, %s3141_s13, %s479_s18  }
 0x14a   : > { %s3435_s3 = sld [smem:[#allocation37_spill]] }
 0x150   : > { %p3436_p11 = scmp.ne.s32.totalorder %s3435_s3, 0 }
 0x151   : > { %s3177_s16 = sand.u32 (!%p3436_p11), 1, %s2700_s22  }
 0x152   : > { %498 = sbr.rel (%p3436_p11) target bundleno = 3035 (0xbdb), region = 68  ;;  %s1835_s0 = sshll.u32 (!%p3436_p11), %s3177_s16, 3 }
 0x153   : > { %s501_s1 = scalar_lea.sflag (!%p3436_p11), [#allocation6], %s3177_s16  ;;  %s504_s29 = scalar_lea.vmem (!%p3436_p11), [#allocation5], %s1835_s0 }
 0x159   : > { %2663 = dma.done.wait (%p3114_p6), %s501_s1, 128  }
 0x15a   : > { %2665 = vsyncadd (%p3114_p6), %s501_s1, 4294967168  ;;  %s3437_s21 = sld [smem:[#allocation36_spill]] }
 0x160   : > { %p3438_p7 = scmp.ne.s32.totalorder %s3437_s21, 0 }
 0x162   : > { %2667 = dma.done.wait (%p3438_p7), [#allocation9], 512  }
 0x163   : > { %2669 = vsyncadd (%p3438_p7), [#allocation9], 4294966784 }
 0x164   : > { %2671 = dma.done.wait (%p3438_p7), [#allocation12], 32  }
 0x165   : > { %2673 = vsyncadd (%p3438_p7), [#allocation12], 4294967264 }
 0x166   : > { %2675 = dma.done.wait (%p3438_p7), [#allocation15], 272  }
 0x167   : > { %2677 = vsyncadd (%p3438_p7), [#allocation15], 4294967024 }
 0x168   : > { %2679 = dma.done.wait (%p3438_p7), [#allocation18], 528  }
 0x169   : > { %2681 = vsyncadd (%p3438_p7), [#allocation18], 4294966768 }
 0x16a   : > { %2683 = dma.done.wait (%p3438_p7), [#allocation21], 32  }
 0x16b   : > { %2685 = vsyncadd (%p3438_p7), [#allocation21], 4294967264 }
 0x16c   : > { %2687 = dma.done.wait (%p3438_p7), [#allocation24], 16  }
 0x16d   : > { %2689 = vsyncadd (%p3438_p7), [#allocation24], 4294967280  ;;  %vm597_vm0 = vcmask 261120   ;;  %v3211_v0 = vld [vmem:[%s504_s29] sm:$0xff]  ;;  %v2228_v2 = vld [vmem:[#allocation8 + $0x8] sm:$0xff]   ;;  %s2732_s20 = smov 64  }
 0x16e   : > { %v598_v1 = vsel %vm597_vm0, %v3211_v0, 0.0  ;;  %v2229_v3 = vld [vmem:[#allocation8] sm:$0xff]   ;;  %s2733_s13 = smov 96   ;;  %v2230_v4 = vld [vmem:[#allocation8 + $0x8] sm:$0xff]   ;;  %v2734_v13 = vmov 0.0   ;;  %vm2735_vm1 = vmmov 0  }
 0x16f   : > { %599 = vadd.xlane.f32.xlu0 %v598_v1  ;;  %v2227_v10 = vld [vmem:[#allocation8] sm:$0xff]   ;;  %1938 = vmatprep.subr.bf16.mxu0 %v2734_v13  ;;  %v2232_v32 = vld [vmem:[#allocation8 + $0x8] sm:$0xff]   ;;  %vm691_vm2 = vcmask 257024   ;;  %s2736_s14 = smov 32   ;;  %vm760_vm3 = vcmask 519424   ;;  %vm859_vm4 = vcmask 64512  }
 0x170   : > { %1946 = vmatprep.subr.bf16.mxu1 %v2734_v13  ;;  %1942 = vmatprep.mubr.msk.bf16.mxu0 %vm2735_vm1, %v2734_v13  ;;  %v1900_v25 = vld [vmem:[#allocation13] ss:$0 sm:$0xff]  ;;  %v1901_v27 = vld [vmem:[#allocation14] ss:$0 sm:$0xff]  ;;  %s2737_s18 = smov 104   ;;  %s2738_s30 = smov 120  }
 0x171   : > { %1950 = vmatprep.mubr.msk.bf16.mxu1 %vm2735_vm1, %v2734_v13  ;;  %v2231_v30 = vld [vmem:[#allocation8] sm:$0xff]   ;;  %s2739_s24 = smov 112   ;;  %s2740_s17 = smov 88   ;;  %vm926_vm5 = vcmask 1043456   ;;  %vm971_vm6 = vcmask 60416   ;;  %vm1098_vm7 = vcmask 126016  }
 0x172   : > { %s2741_s12 = smov 80   ;;  %s2742_s3 = smov 72   ;;  %vm1225_vm8 = vcmask 191616   ;;  %vm1352_vm9 = vcmask 257216   ;;  %vm1562_vm10 = vcmask 523264  }
 0x173   : > { %767 = vadd.xlane.f32.xlu0 %v598_v1  ;;  %s2743_s1 = smov 8   ;;  %s2744_s29 = smov 16  }
 0x174   : > { %s2745_s21 = smov 24   ;;  %p3441_p5 = scmp.ne.s32.totalorder %s3430_s28, 0 }
 0x189   : > { %709 = vrot.lane.b32.xlu0 %v2228_v2, %s2732_s20 }
 0x18d   : > { %641 = vrot.lane.b32.xlu0 %v2229_v3, %s2733_s13 }
 0x191   : > { %643 = vrot.lane.b32.xlu0 %v2230_v4, %s2733_s13 }
 0x1fc   : > { %v600_v5 = vpop.xlane.xlu0 %599 }
 0x1fd   : > { %v602_v6 = vmul.f32 0.03125, %v600_v5 }
 0x1ff   : > { %v603_v7 = vsub.f32 %v3211_v0, %v602_v6 }
 0x200   : > { %v768_v11 = vpop.xlane.xlu0 %767 }
 0x201   : > { %v604_v8 = vmul.f32 %v603_v7, %v603_v7  ;;  %v770_v16 = vmul.f32 0.03125, %v768_v11 }
 0x203   : > { %v605_v9 = vsel %vm597_vm0, %v604_v8, 0.0  ;;  %v771_v17 = vsub.f32 %v3211_v0, %v770_v16 }
 0x204   : > { %606 = vadd.xlane.f32.xlu1 %v605_v9  ;;  %v710_v12 = vpop.permute.xlu0 %709 }
 0x205   : > { %v772_v18 = vmul.f32 %v771_v17, %v771_v17 }
 0x207   : > { %v773_v19 = vsel %vm597_vm0, %v772_v18, 0.0 }
 0x208   : > { %v642_v14 = vpop.permute.xlu0 %641 }
 0x209   : > { %1939 = vmatpush3.bf16.msra.mxu0 %v642_v14 }
 0x20a   : > { %1940 = vmatprep.subr.bf16.mxu0 %v2734_v13 }
 0x20c   : > { %v644_v15 = vpop.permute.xlu0 %643 }
 0x20d   : > { %1941 = vmatpush3.bf16.msra.mxu0 %v644_v15 }
 0x20e   : > { %1954 = vmatprep.subr.bf16.mxu0 %v2734_v13 }
 0x215   : > { %707 = vrot.lane.b32.xlu1 %v2227_v10, %s2732_s20  ;;  %s3439_s20 = sld [smem:[#allocation35_spill]] }
 0x239   : > { %774 = vadd.xlane.f32.xlu1 %v773_v19 }
 0x291   : > { %v607_v20 = vpop.xlane.xlu1 %606 }
 0x292   : > { %v608_v21 = vmul.f32 0.03125, %v607_v20 }
 0x294   : > { %v609_v22 = vadd.f32 1e-05, %v608_v21 }
 0x295   : > { %v708_v23 = vpop.permute.xlu1 %707 }
 0x296   : > { %2248 = vrsqrt.f32 %v609_v22  ;;  %1947 = vmatpush3.bf16.msra.mxu1 %v708_v23 }
 0x297   : > { %1948 = vmatprep.subr.bf16.mxu1 %v2734_v13 }
 0x29a   : > { %1949 = vmatpush3.bf16.msra.mxu1 %v710_v12 }
 0x29b   : > { %1962 = vmatprep.subr.bf16.mxu1 %v2734_v13 }
 0x2a0   : > { %v2249_v24 = vpop.eup %2248 }
 0x2a1   : > { %v611_v26 = vmul.f32 %v2249_v24, %v603_v7 }
 0x2a3   : > { %v618_v28 = vmul.f32 %v1900_v25, %v611_v26 }
 0x2a5   : > { %v625_v29 = vadd.f32 %v1901_v27, %v618_v28 }
 0x2a7   : > { %v626_v31 = vpack.c.bf16 %v625_v29, %v625_v29 }
 0x2a9   : > { %1943 = vmatmul.mubr.msk.bf16.vlgmr.msra.gmra.mrb[0].mxu0 %vm597_vm0, %v626_v31  ;;  %1951 = vmatmul.mubr.msk.bf16.vlgmr.msra.gmra.mrb[0].mxu1 %vm597_vm0, %v626_v31 }
 0x2aa   : > { %1955 = vmatpush3.bf16.msra.mxu0 %v2231_v30  ;;  %1958 = vmatprep.mubr.msk.bf16.mxu0 %vm2735_vm1, %v2734_v13 }
 0x2ab   : > { %1956 = vmatprep.subr.bf16.mxu0 %v2734_v13  ;;  %1964 = vmatprep.mubr.msk.bf16.mxu1 %vm2735_vm1, %v2734_v13 }
 0x2ae   : > { %1957 = vmatpush3.bf16.msra.mxu0 %v2232_v32 }
 0x2af   : > { %1968 = vmatprep.subr.bf16.mxu0 %v2734_v13 }
 0x2c6   : > { %v775_v33 = vpop.xlane.xlu1 %774 }
 0x2c7   : > { %v776_v34 = vmul.f32 0.03125, %v775_v33 }
 0x2c9   : > { %v777_v35 = vadd.f32 1e-05, %v776_v34 }
 0x2cb   : > { %2250 = vrsqrt.f32 %v777_v35 }
 0x2d5   : > { %v2251_v36 = vpop.eup %2250 }
 0x2d6   : > { %v779_v37 = vmul.f32 %v2251_v36, %v771_v17 }
 0x2d8   : > { %v786_v38 = vmul.f32 %v1900_v25, %v779_v37 }
 0x2da   : > { %v793_v39 = vadd.f32 %v1901_v27, %v786_v38 }
 0x2dc   : > { %v794_v40 = vpack.c.bf16 %v793_v39, %v793_v39 }
 0x2de   : > { %1959 = vmatmul.mubr.msk.bf16.vlgmr.msra.gmra.mrb[4].mxu0 %vm597_vm0, %v794_v40 }
 0x2df   : > { %1970 = vmatprep.mubr.msk.bf16.mxu0 %vm2735_vm1, %v2734_v13 }
 0x37c   : > { %v684_v41 = vpop.f32.mrb[0].mxu0  ;;  %v747_v42 = vpop.f32.mrb[0].mxu1 }
 0x37d   : > { %v690_v43 = vpack.c.bf16 %v684_v41, %v684_v41  ;;  %v1896_v44 = vpack.c.bf16 %v747_v42, %v747_v42  ;;  %v1944_v45 = vpop.f32.mrb[1].mxu0  ;;  %v1952_v46 = vpop.f32.mrb[1].mxu1 }
 0x37e   : > { %v687_v47 = vpop.f32.mrb[2].mxu0  ;;  %v750_v48 = vpop.f32.mrb[2].mxu1 }
 0x37f   : > { %692 = vst.msk [vmem:[#allocation2] sm:$0xf] %vm691_vm2, %v690_v43  ;;  %757 = vrot.lane.b32.xlu0 %v1896_v44, %s2736_s14  ;;  %v1945_v49 = vpop.f32.mrb[3].mxu0  ;;  %v1953_v50 = vpop.f32.mrb[3].mxu1  ;;  %s588_s14 = scalar_lea.vmem [#allocation25], %s1835_s0 }
 0x3b1   : > { %v848_v51 = vpop.f32.mrb[4].mxu0 }
 0x3b2   : > { %v854_v52 = vpack.c.bf16 %v848_v51, %v848_v51  ;;  %v1960_v53 = vpop.f32.mrb[5].mxu0 }
 0x3b3   : > { %v851_v54 = vpop.f32.mrb[6].mxu0 }
 0x3b4   : > { %856 = vst.msk [vmem:[#allocation3] sm:$0xf] %vm691_vm2, %v854_v52  ;;  %v1961_v55 = vpop.f32.mrb[7].mxu0 }
 0x3bb   : > { %v2235_v61 = vld [vmem:[#allocation3] ss:$0 sps:$4 sm:$0xff]  }
 0x3bc   : > { %v857_v62 = vld [vmem:[#allocation3] sm:$0xf] }
 0x3bd   : > { %v2237_v1 = vld [vmem:[#allocation3] ss:$0 sps:$4 sm:$0xff]  }
 0x3be   : > { %v2238_v2 = vld [vmem:[#allocation3] ss:$0 sps:$4 sm:$0xff]  }
 0x3f1   : > { %v758_v56 = vpop.permute.xlu0 %757 }
 0x3f2   : > { %761 = vst.msk [vmem:[#allocation2] sm:$0xf] %vm760_vm3, %v758_v56 }
 0x3f9   : > { %v3244_v57 = vld [vmem:[#allocation2] sm:$0xf] }
 0x3fa   : > { %v3246_v58 = vld [vmem:[#allocation2] ss:$0 sps:$4 sm:$0xff]   ;;  %v864_v59 = vsel %vm859_vm4, %v3244_v57, 0  ;;  %v1859_v53 = vcombine.low %v3244_v57, %v3244_v57 }
 0x3fb   : > { %v3250_v60 = vld [vmem:[#allocation2] ss:$0 sps:$4 sm:$0xff]   ;;  %1963 = vmatpush3.bf16.xpose.msra.mxu1 %v864_v59  ;;  %1237 = vrot.lane.b32.xlu1 %v3246_v58, %s2737_s18 }
 0x3fc   : > { %983 = vrot.lane.b32.xlu0 %v3250_v60, %s2738_s30  ;;  %1974 = vmatprep.subr.bf16.mxu1 %v2734_v13  ;;  %v3256_v63 = vld [vmem:[#allocation2] ss:$0 sps:$4 sm:$0xff]  }
 0x400   : > { %978 = vrot.lane.b32.xlu0 %v2235_v61, %s2738_s30 }
 0x402   : > { %1965 = vmatmul.mubr.msk.bf16.vlgmr.msra.gmra.mrb[4].mxu1 %vm859_vm4, %v857_v62 }
 0x403   : > { %1976 = vmatprep.mubr.msk.bf16.mxu1 %vm2735_vm1, %v2734_v13 }
 0x404   : > { %1110 = vrot.lane.b32.xlu0 %v3256_v63, %s2739_s24 }
 0x408   : > { %1105 = vrot.lane.b32.xlu0 %v2237_v1, %s2739_s24 }
 0x40c   : > { %1232 = vrot.lane.b32.xlu0 %v2238_v2, %s2737_s18  ;;  %s1631_s18 = sshll.u32 %s588_s14, 4  ;;  %s3331_s18 = int_to_ptr.vmem [resolvable:$true] %s1631_s18 }
 0x40d   : > { %s2610_s0 = scalar_lea.vmem %s3331_s18, 128 }
 0x40e   : > { %p2611_p6 = scmp.ne.s32.totalorder %s3331_s18, %s2610_s0 }
 0x410   : > { %p2612_p10 = pnand %p2611_p6, %p3441_p5 }
 0x412   : > { %p2613_p1 = pneg %p2612_p10 }
 0x46d   : > { %v1238_v8 = vpop.permute.xlu1 %1237 }
 0x46e   : > { %v984_v3 = vpop.permute.xlu0 %983  ;;  %v1243_v10 = vsel %vm859_vm4, %v1238_v8, 0 }
 0x46f   : > { %v989_v4 = vsel %vm859_vm4, %v984_v3, 0 }
 0x470   : > { %1975 = vmatpush3.bf16.xpose.msra.mxu1 %v989_v4 }
 0x471   : > { %1986 = vmatprep.subr.bf16.mxu1 %v2734_v13 }
 0x472   : > { %v979_v5 = vpop.permute.xlu0 %978 }
 0x476   : > { %v1111_v6 = vpop.permute.xlu0 %1110 }
 0x477   : > { %v1116_v7 = vsel %vm859_vm4, %v1111_v6, 0  ;;  %1977 = vmatmul.mubr.msk.bf16.vlgmr.msra.gmra.mrb[8].mxu1 %vm859_vm4, %v979_v5 }
 0x478   : > { %1987 = vmatpush3.bf16.xpose.msra.mxu1 %v1116_v7  ;;  %1988 = vmatprep.mubr.msk.bf16.mxu1 %vm2735_vm1, %v2734_v13 }
 0x479   : > { %1998 = vmatprep.subr.bf16.mxu1 %v2734_v13 }
 0x47a   : > { %v1106_v9 = vpop.permute.xlu0 %1105 }
 0x47e   : > { %v1233_v11 = vpop.permute.xlu0 %1232 }
 0x47f   : > { %1989 = vmatmul.mubr.msk.bf16.vlgmr.msra.gmra.mrb[12].mxu1 %vm859_vm4, %v1106_v9 }
 0x480   : > { %1999 = vmatpush3.bf16.xpose.msra.mxu1 %v1243_v10  ;;  %2000 = vmatprep.mubr.msk.bf16.mxu1 %vm2735_vm1, %v2734_v13 }
 0x481   : > { %2010 = vmatprep.subr.bf16.mxu1 %v2734_v13 }
 0x487   : > { %2001 = vmatmul.mubr.msk.bf16.vlgmr.msra.gmra.mrb[16].mxu1 %vm859_vm4, %v1233_v11 }
 0x488   : > { %2014 = vmatprep.mubr.msk.bf16.mxu1 %vm2735_vm1, %v2734_v13 }
 0x4d5   : > { %v900_v12 = vpop.f32.mrb[4].mxu1 }
 0x4d6   : > { %v1966_v14 = vpop.f32.mrb[5].mxu1  ;;  %v906_v15 = vsel %vm859_vm4, %v900_v12, -inf }
 0x4d7   : > { %907 = vmax.xlane.f32.xlu0 %v906_v15  ;;  %v903_v16 = vpop.f32.mrb[6].mxu1 }
 0x4d8   : > { %v1967_v17 = vpop.f32.mrb[7].mxu1 }
 0x54a   : > { %v1025_v18 = vpop.f32.mrb[8].mxu1 }
 0x54b   : > { %v1978_v19 = vpop.f32.mrb[9].mxu1  ;;  %v1031_v20 = vsel %vm859_vm4, %v1025_v18, -inf }
 0x54c   : > { %1032 = vmax.xlane.f32.xlu1 %v1031_v20  ;;  %v1028_v21 = vpop.f32.mrb[10].mxu1 }
 0x54d   : > { %v1979_v22 = vpop.f32.mrb[11].mxu1 }
 0x552   : > { %v1152_v23 = vpop.f32.mrb[12].mxu1 }
 0x553   : > { %v1990_v24 = vpop.f32.mrb[13].mxu1  ;;  %v1158_v25 = vsel %vm859_vm4, %v1152_v23, -inf }
 0x554   : > { %1159 = vmax.xlane.f32.xlu0 %v1158_v25  ;;  %v1155_v26 = vpop.f32.mrb[14].mxu1 }
 0x555   : > { %v1991_v27 = vpop.f32.mrb[15].mxu1  ;;  %v2240_v26 = vld [vmem:[#allocation10] sm:$0xff]  }
 0x556   : > { %2011 = vmatpush3.bf16.msra.mxu1 %v2240_v26 }
 0x557   : > { %2012 = vmatprep.subr.bf16.mxu1 %v2734_v13 }
 0x55a   : > { %v1279_v28 = vpop.f32.mrb[16].mxu1 }
 0x55b   : > { %v2002_v29 = vpop.f32.mrb[17].mxu1  ;;  %v1285_v30 = vsel %vm859_vm4, %v1279_v28, -inf }
 0x55c   : > { %1286 = vmax.xlane.f32.xlu0 %v1285_v30  ;;  %v1282_v31 = vpop.f32.mrb[18].mxu1 }
 0x55d   : > { %1043 = vrot.lane.b32.xlu1 %v3250_v60, %s2740_s17  ;;  %v2003_v32 = vpop.f32.mrb[19].mxu1  ;;  %s3440_s17 = sld [smem:[#allocation42_spill]] }
 0x564   : > { %v908_v33 = vpop.xlane.xlu0 %907 }
 0x565   : > { %v909_v34 = vsub.f32 %v900_v12, %v908_v33 }
 0x567   : > { %v910_v35 = vmul.f32 1.442695, %v909_v34 }
 0x569   : > { %2252 = vpow2.f32 %v910_v35 }
 0x573   : > { %v2253_v36 = vpop.eup %2252 }
 0x574   : > { %v912_v37 = vsel %vm859_vm4, %v2253_v36, 0.0 }
 0x575   : > { %913 = vadd.xlane.f32.xlu0 %v912_v37 }
 0x5d9   : > { %v1033_v38 = vpop.xlane.xlu1 %1032 }
 0x5da   : > { %v1034_v39 = vsub.f32 %v1025_v18, %v1033_v38 }
 0x5dc   : > { %v1035_v40 = vmul.f32 1.442695, %v1034_v39 }
 0x5dd   : > { %v1044_v61 = vpop.permute.xlu1 %1043 }
 0x5de   : > { %2254 = vpow2.f32 %v1035_v40 }
 0x5e1   : > { %v1160_v41 = vpop.xlane.xlu0 %1159 }
 0x5e2   : > { %v1161_v42 = vsub.f32 %v1152_v23, %v1160_v41 }
 0x5e4   : > { %v1162_v43 = vmul.f32 1.442695, %v1161_v42 }
 0x5e6   : > { %2256 = vpow2.f32 %v1162_v43  ;;  %v1879_v43 = vld [vmem:[#allocation11] ss:$0 sm:$0xff] }
 0x5e8   : > { %v2255_v44 = vpop.eup %2254 }
 0x5e9   : > { %v1287_v45 = vpop.xlane.xlu0 %1286  ;;  %v1037_v46 = vsel %vm859_vm4, %v2255_v44, 0.0 }
 0x5ea   : > { %v1288_v47 = vsub.f32 %v1279_v28, %v1287_v45  ;;  %1038 = vadd.xlane.f32.xlu0 %v1037_v46  ;;  %v2241_v28 = vld [vmem:[#allocation10 + $0x8] sm:$0xff]  }
 0x5eb   : > { %2013 = vmatpush3.bf16.msra.mxu1 %v2241_v28 }
 0x5ec   : > { %v1289_v48 = vmul.f32 1.442695, %v1288_v47  ;;  %2026 = vmatprep.subr.bf16.mxu1 %v2734_v13 }
 0x5ee   : > { %2258 = vpow2.f32 %v1289_v48 }
 0x5f0   : > { %v2257_v49 = vpop.eup %2256 }
 0x5f1   : > { %v1164_v50 = vsel %vm859_vm4, %v2257_v49, 0.0 }
 0x5f2   : > { %1165 = vadd.xlane.f32.xlu0 %v1164_v50 }
 0x5f8   : > { %v2259_v51 = vpop.eup %2258 }
 0x5f9   : > { %v1291_v52 = vsel %vm859_vm4, %v2259_v51, 0.0 }
 0x5fa   : > { %1292 = vadd.xlane.f32.xlu1 %v1291_v52 }
 0x602   : > { %v914_v54 = vpop.xlane.xlu0 %913 }
 0x603   : > { %2260 = vrcp.f32 %v914_v54 }
 0x608   : > { %921 = vrot.lane.b32.xlu0 %v1859_v53, %s2733_s13  ;;  %s1893_s13 = sshll.u32 %s3439_s20, 7 }
 0x60b   : > { %1170 = vrot.lane.b32.xlu1 %v3256_v63, %s2741_s12  ;;  %s3329_s12 = scalar_lea.hbm %s3440_s17, %s1893_s13 }
 0x60c   : > { %1297 = vrot.lane.b32.xlu0 %v3246_v58, %s2742_s3  ;;  %v1049_v58 = vsel %vm926_vm5, %v1044_v61, 0  ;;  %s1617_s3 = scalar_lea.sflag [#allocation7], %s3177_s16 }
 0x60d   : > { %v2261_v56 = vpop.eup %2260 }
 0x60e   : > { %v916_v60 = vmul.f32 %v2261_v56, %v2253_v36  ;;  %v2243_v56 = vld [vmem:[#allocation16 + $0x8] sm:$0xff]  }
 0x610   : > { %v917_v1 = vpack.c.bf16 %v916_v60, %v916_v60 }
 0x677   : > { %v1039_v55 = vpop.xlane.xlu0 %1038 }
 0x678   : > { %2262 = vrcp.f32 %v1039_v55  ;;  %v2242_v55 = vld [vmem:[#allocation16] sm:$0xff]  }
 0x67f   : > { %v1166_v59 = vpop.xlane.xlu0 %1165 }
 0x680   : > { %2264 = vrcp.f32 %v1166_v59 }
 0x682   : > { %v2263_v63 = vpop.eup %2262 }
 0x683   : > { %v922_v62 = vpop.permute.xlu0 %921  ;;  %v1041_v3 = vmul.f32 %v2263_v63, %v2255_v44 }
 0x684   : > { %v928_v57 = vsel %vm926_vm5, %v922_v62, 0  ;;  %v1880_v62 = vld [vmem:[#allocation22] ss:$0 sm:$0xff] }
 0x685   : > { %1969 = vmatpush3.bf16.msra.mxu0 %v928_v57  ;;  %v1042_v5 = vpack.c.bf16 %v1041_v3, %v1041_v3  ;;  %v2244_v3 = vld [vmem:[#allocation19] sm:$0xff]  }
 0x686   : > { %1980 = vmatprep.subr.bf16.mxu0 %v2734_v13 }
 0x687   : > { %v1293_v2 = vpop.xlane.xlu1 %1292  ;;  %v1298_v9 = vpop.permute.xlu0 %1297 }
 0x688   : > { %1971 = vmatmul.mubr.msk.bf16.vlgmr.msra.gmra.mrb[8].mxu0 %vm859_vm4, %v917_v1  ;;  %2266 = vrcp.f32 %v1293_v2  ;;  %v1303_v12 = vsel %vm926_vm5, %v1298_v9, 0  ;;  %v1881_v1 = vld [vmem:[#allocation23] ss:$0 sm:$0xff] }
 0x689   : > { %1981 = vmatpush3.bf16.msra.mxu0 %v1049_v58  ;;  %1982 = vmatprep.mubr.msk.bf16.mxu0 %vm2735_vm1, %v2734_v13 }
 0x68a   : > { %1992 = vmatprep.subr.bf16.mxu0 %v2734_v13  ;;  %v2265_v6 = vpop.eup %2264 }
 0x68b   : > { %v1171_v4 = vpop.permute.xlu1 %1170  ;;  %v1168_v8 = vmul.f32 %v2265_v6, %v2257_v49  ;;  %v2247_v6 = vld [vmem:[#allocation19 + $0x18] sm:$0xff]  }
 0x68c   : > { %v1176_v7 = vsel %vm926_vm5, %v1171_v4, 0  ;;  %v2245_v4 = vld [vmem:[#allocation19 + $0x8] sm:$0xff]  }
 0x68d   : > { %v1169_v10 = vpack.c.bf16 %v1168_v8, %v1168_v8 }
 0x690   : > { %1983 = vmatmul.mubr.msk.bf16.vlgmr.msra.gmra.mrb[12].mxu0 %vm859_vm4, %v1042_v5  ;;  %v2246_v5 = vld [vmem:[#allocation19 + $0x10] sm:$0xff]  }
 0x691   : > { %1993 = vmatpush3.bf16.msra.mxu0 %v1176_v7  ;;  %1994 = vmatprep.mubr.msk.bf16.mxu0 %vm2735_vm1, %v2734_v13  ;;  %v1882_v7 = vld [vmem:[#allocation17] ss:$0 sm:$0xff] }
 0x692   : > { %2004 = vmatprep.subr.bf16.mxu0 %v2734_v13  ;;  %v2267_v11 = vpop.eup %2266 }
 0x693   : > { %v1295_v14 = vmul.f32 %v2267_v11, %v2259_v51 }
 0x695   : > { %v1296_v15 = vpack.c.bf16 %v1295_v14, %v1295_v14 }
 0x698   : > { %1995 = vmatmul.mubr.msk.bf16.vlgmr.msra.gmra.mrb[16].mxu0 %vm859_vm4, %v1169_v10 }
 0x699   : > { %2005 = vmatpush3.bf16.msra.mxu0 %v1303_v12  ;;  %2006 = vmatprep.mubr.msk.bf16.mxu0 %vm2735_vm1, %v2734_v13 }
 0x69a   : > { %2018 = vmatprep.subr.bf16.mxu0 %v2734_v13 }
 0x6a0   : > { %2007 = vmatmul.mubr.msk.bf16.vlgmr.msra.gmra.mrb[20].mxu0 %vm859_vm4, %v1296_v15 }
 0x6a1   : > { %2022 = vmatprep.mubr.msk.bf16.mxu0 %vm2735_vm1, %v2734_v13  ;;  %2019 = vmatpush3.bf16.msra.mxu0 %v2242_v55 }
 0x6a2   : > { %2020 = vmatprep.subr.bf16.mxu0 %v2734_v13 }
 0x6a5   : > { %2021 = vmatpush3.bf16.msra.mxu0 %v2243_v56 }
 0x75b   : > { %v964_v16 = vpop.f32.mrb[8].mxu0 }
 0x75c   : > { %v970_v17 = vpack.c.bf16 %v964_v16, %v964_v16  ;;  %v1972_v18 = vpop.f32.mrb[9].mxu0 }
 0x75d   : > { %v967_v19 = vpop.f32.mrb[10].mxu0 }
 0x75e   : > { %972 = vst.msk [vmem:[#allocation4] sm:$0xf] %vm971_vm6, %v970_v17  ;;  %v1973_v20 = vpop.f32.mrb[11].mxu0 }
 0x763   : > { %v1085_v21 = vpop.f32.mrb[12].mxu0 }
 0x764   : > { %v1897_v22 = vpack.c.bf16 %v1085_v21, %v1085_v21  ;;  %v1984_v23 = vpop.f32.mrb[13].mxu0 }
 0x765   : > { %v1088_v24 = vpop.f32.mrb[14].mxu0 }
 0x766   : > { %1095 = vrot.lane.b32.xlu1 %v1897_v22, %s2743_s1  ;;  %v1985_v25 = vpop.f32.mrb[15].mxu0  ;;  %v1891_v24 = vld [vmem:[#allocation20] ss:$0 sm:$0xff]  ;;  %s2746_s1 = smov [#allocation25]  }
 0x76b   : > { %v1212_v27 = vpop.f32.mrb[16].mxu0 }
 0x76c   : > { %v1898_v29 = vpack.c.bf16 %v1212_v27, %v1212_v27  ;;  %v1996_v30 = vpop.f32.mrb[17].mxu0 }
 0x76d   : > { %v1215_v31 = vpop.f32.mrb[18].mxu0 }
 0x76e   : > { %1222 = vrot.lane.b32.xlu0 %v1898_v29, %s2744_s29  ;;  %v1997_v32 = vpop.f32.mrb[19].mxu0  ;;  %s2614_s29 = sshll.u32 %s2746_s1, 4  ;;  %s2615_s29 = int_to_ptr.vmem [resolvable:$false] %s2614_s29 }
 0x76f   : > { %p2617_p2 = scmp.lt.s32.totalorder %s3331_s18, %s2615_s29 }
 0x773   : > { %v1339_v33 = vpop.f32.mrb[20].mxu0 }
 0x774   : > { %v1899_v34 = vpack.c.bf16 %v1339_v33, %v1339_v33  ;;  %v2008_v35 = vpop.f32.mrb[21].mxu0 }
 0x775   : > { %v1342_v36 = vpop.f32.mrb[22].mxu0 }
 0x776   : > { %1349 = vrot.lane.b32.xlu1 %v1899_v34, %s2745_s21  ;;  %v2009_v37 = vpop.f32.mrb[23].mxu0  ;;  %s2616_s21 = scalar_lea.vmem %s2615_s29, 256 }
 0x777   : > { %p2618_p4 = scmp.lt.s32.totalorder %s2616_s21, %s2610_s0 }
 0x779   : > { %p2619_p9 = por %p2618_p4, %p2617_p2 }
 0x77b   : > { %p2620_p8 = pnand %p2619_p9, %p2613_p1 }
 0x7d8   : > { %v1096_v38 = vpop.permute.xlu1 %1095 }
 0x7d9   : > { %1099 = vst.msk [vmem:[#allocation4] sm:$0xf] %vm1098_vm7, %v1096_v38 }
 0x7e0   : > { %v1223_v39 = vpop.permute.xlu0 %1222 }
 0x7e1   : > { %1226 = vst.msk [vmem:[#allocation4] sm:$0xf] %vm1225_vm8, %v1223_v39 }
 0x7e8   : > { %v1350_v40 = vpop.permute.xlu1 %1349 }
 0x7e9   : > { %1353 = vst.msk [vmem:[#allocation4] sm:$0xf] %vm1352_vm9, %v1350_v40 }
 0x7f0   : > { %v1355_v41 = vld [vmem:[#allocation4] sm:$0xf] }
 0x7f1   : > { %2015 = vmatmul.mubr.msk.bf16.vlgmr.msra.gmra.mrb[20].mxu1 %vm597_vm0, %v1355_v41 }
 0x7f2   : > { %2034 = vmatprep.mubr.msk.bf16.mxu1 %vm2735_vm1, %v2734_v13  ;;  %2027 = vmatpush3.bf16.msra.mxu1 %v2244_v3 }
 0x7f3   : > { %2028 = vmatprep.subr.bf16.mxu1 %v2734_v13 }
 0x7f6   : > { %2029 = vmatpush3.bf16.msra.mxu1 %v2245_v4 }
 0x7f7   : > { %2030 = vmatprep.subr.bf16.mxu1 %v2734_v13 }
 0x7fa   : > { %2031 = vmatpush3.bf16.msra.mxu1 %v2246_v5 }
 0x7fb   : > { %2032 = vmatprep.subr.bf16.mxu1 %v2734_v13 }
 0x7fe   : > { %2033 = vmatpush3.bf16.msra.mxu1 %v2247_v6 }
 0x8c4   : > { %v1409_v42 = vpop.f32.mrb[20].mxu1 }
 0x8c5   : > { %v1415_v44 = vadd.f32 %v1409_v42, %v3211_v0  ;;  %v2016_v45 = vpop.f32.mrb[21].mxu1 }
 0x8c6   : > { %v1412_v46 = vpop.f32.mrb[22].mxu1 }
 0x8c7   : > { %v1423_v47 = vadd.f32 %v1879_v43, %v1415_v44  ;;  %v2017_v48 = vpop.f32.mrb[23].mxu1 }
 0x8c9   : > { %v1426_v49 = vsel %vm597_vm0, %v1423_v47, 0.0 }
 0x8ca   : > { %1427 = vadd.xlane.f32.xlu0 %v1426_v49 }
 0x957   : > { %v1428_v50 = vpop.xlane.xlu0 %1427 }
 0x958   : > { %v1429_v51 = vmul.f32 0.03125, %v1428_v50 }
 0x95a   : > { %v1430_v52 = vsub.f32 %v1423_v47, %v1429_v51 }
 0x95c   : > { %v1431_v53 = vmul.f32 %v1430_v52, %v1430_v52 }
 0x95e   : > { %v1432_v54 = vsel %vm597_vm0, %v1431_v53, 0.0 }
 0x95f   : > { %1433 = vadd.xlane.f32.xlu1 %v1432_v54 }
 0x9ec   : > { %v1434_v0 = vpop.xlane.xlu1 %1433 }
 0x9ed   : > { %v1435_v59 = vmul.f32 0.03125, %v1434_v0 }
 0x9ef   : > { %v1436_v60 = vadd.f32 1e-05, %v1435_v59 }
 0x9f1   : > { %2268 = vrsqrt.f32 %v1436_v60 }
 0x9fb   : > { %v2269_v61 = vpop.eup %2268 }
 0x9fc   : > { %v1438_v57 = vmul.f32 %v2269_v61, %v1430_v52 }
 0x9fe   : > { %v1445_v63 = vmul.f32 %v1880_v62, %v1438_v57 }
 0xa00   : > { %v1452_v2 = vadd.f32 %v1881_v1, %v1445_v63 }
 0xa02   : > { %v1453_v58 = vpack.c.bf16 %v1452_v2, %v1452_v2 }
 0xa04   : > { %2023 = vmatmul.mubr.msk.bf16.vlgmr.msra.gmra.mrb[24].mxu0 %vm597_vm0, %v1453_v58 }
 0xad7   : > { %v1514_v8 = vpop.f32.mrb[24].mxu0 }
 0xad8   : > { %v1515_v9 = vadd.f32 %v1882_v7, %v1514_v8  ;;  %v2024_v10 = vpop.f32.mrb[25].mxu0 }
 0xad9   : > { %v1517_v11 = vpop.f32.mrb[26].mxu0 }
 0xada   : > { %v1521_v12 = vmul.f32 0.044715, %v1515_v9  ;;  %v2025_v14 = vpop.f32.mrb[27].mxu0  ;;  %v1520_v20 = vmul.f32 0.5, %v1515_v9 }
 0xadc   : > { %v1522_v15 = vmul.f32 %v1521_v12, %v1515_v9 }
 0xade   : > { %v1523_v16 = vmul.f32 %v1522_v15, %v1515_v9 }
 0xae0   : > { %v1524_v17 = vadd.f32 %v1523_v16, %v1515_v9 }
 0xae2   : > { %v1525_v18 = vmul.f32 0.7978846, %v1524_v17 }
 0xae4   : > { %2270 = vtanh.f32 %v1525_v18 }
 0xaee   : > { %v2271_v19 = vpop.eup %2270 }
 0xaef   : > { %v1527_v21 = vadd.f32 1.0, %v2271_v19 }
 0xaf1   : > { %v1528_v22 = vmul.f32 %v1527_v21, %v1520_v20 }
 0xaf3   : > { %v1529_v13 = vpack.c.bf16 %v1528_v22, %v1528_v22 }
 0xaf5   : > { %2035 = vmatmul.mubr.msk.bf16.vlgmr.msra.gmra.mrb[24].mxu1 %vm1562_vm10, %v1529_v13 }
 0xbc8   : > { %v1600_v23 = vpop.f32.mrb[24].mxu1 }
 0xbc9   : > { %v1606_v25 = vadd.f32 %v1600_v23, %v1423_v47  ;;  %v2036_v26 = vpop.f32.mrb[25].mxu1 }
 0xbca   : > { %v1603_v27 = vpop.f32.mrb[26].mxu1 }
 0xbcb   : > { %v1614_v28 = vadd.f32 %v1891_v24, %v1606_v25  ;;  %v2037_v29 = vpop.f32.mrb[27].mxu1 }
 0xbcd   : > { %1615 = vst.msk [vmem:[%s588_s14] sm:$0xff] %vm597_vm0, %v1614_v28 }
 0xbce   : > { %2623 = shalt.err (!%p2620_p8)
}
 0xbcf   : > { %s2624_s16 = scalar_lea.hbm %s3329_s12, 128  ;;  %s2628_s14 = scalar_lea.hbm %s3440_s17, 256 }
 0xbd0   : > { %p2625_p3 = scmp.ne.s32.totalorder %s3329_s12, %s2624_s16  ;;  %p2629_p0 = scmp.lt.u32.totalorder %s3329_s12, %s3440_s17 }
 0xbd1   : > { %p2630_p11 = scmp.lt.u32.totalorder %s2628_s14, %s2624_s16  ;;  %p2632_p6 = scmp.lt.u32.totalorder %s2624_s16, %s3329_s12 }
 0xbd2   : > { %p2626_p12 = pnand %p2625_p3, %p3441_p5 }
 0xbd3   : > { %p2631_p7 = por %p2630_p11, %p2629_p0 }
 0xbd4   : > { %p2627_p13 = pneg %p2626_p12 }
 0xbd5   : > { %p2633_p10 = por %p2632_p6, %p2631_p7 }
 0xbd7   : > { %p2634_p1 = pnand %p2633_p10, %p2627_p13 }
 0xbd9   : > { %2637 = shalt.err (!%p2634_p1)
}
 0xbda   : > { %2084 = dma.vmem_to_hbm [thread:$0]  (%p3441_p5), %s3331_s18, 128, %s3329_s12, %s1617_s3  }
 0xbdb PF: > { %s3442_s0 = sld [smem:[#allocation34_spill]]  ;;  %p3443_p2 = scmp.ne.s32.totalorder %s3431_s27, 0 }
 0xbdc   : > { %p3444_p4 = scmp.ge.s32.totalorder %s2716_s26, 2 }
 0xbde   : > { %p2125_p9 = pnand %p3444_p4, %p3443_p2 }
 0xbe1   : > { %s1643_s1 = sand.u32 1, %s3442_s0  }
 0xbe2   : > { %s1644_s29 = scalar_lea.sflag [#allocation7], %s1643_s1 }
 0xbe3   : > { %2691 = dma.done.wait (!%p2125_p9), %s1644_s29, 128  }
 0xbe4   : > { %2693 = vsyncadd (!%p2125_p9), %s1644_s29, 4294967168  ;;  %s34_s26 = sadd.s32 1, %s2716_s26   ;;  %s3445_s21 = smov %s2700_s22 }
 0xbe5   : > { %p31_p8 = scmp.ge.s32.totalorder %s34_s26, 4   ;;  %s3446_s22 = smov %s2704_s23 }
 0xbe6   : > { %s3447_s23 = smov %s3128_s15  ;;  %s3448_s24 = smov %s2712_s25 }
 0xbe7   : > { %s3449_s25 = smov %s3451_s19  ;;  %33 = sbr.rel (!%p31_p8) target bundleno = 18 (0x12), region = 162 }
 0xbee   :  { %1649 = vsyncpa [#allocation6], 1 }
 0xbef   :  { %1651 = vsyncpa [#allocation6 + $0x1], 1 }
 0xbf0   :  { %1652 = vsyncpa [#allocation9], 1 }
 0xbf1   :  { %1653 = vsyncpa [#allocation12], 1 }
 0xbf2   :  { %1654 = vsyncpa [#allocation15], 1 }
 0xbf3   :  { %1655 = vsyncpa [#allocation18], 1 }
 0xbf4   :  { %1656 = vsyncpa [#allocation21], 1 }
 0xbf5   :  { %1657 = vsyncpa [#allocation24], 1 }
 0xbf6   :  { %1658 = vsyncpa [#allocation7], 1 }
 0xbf7   :  { %1660 = vsyncpa [#allocation7 + $0x1], 1 }

</bundles_post_ra>
